<compile_context>
chip_gen: v5e
topology: v5e:2x2
jax: 0.10.0
libtpu: 0.0.40
codegen_flags: <defaults>
</compile_context>

<pallas_src>
import math
import functools
import jax
import jax.numpy as jnp
from jax import lax
from jax.experimental import pallas as pl
from jax.experimental.pallas import tpu as pltpu


# ----------------------------- fused encoder-layer kernel -----------------------------

def _layernorm(z, g, b, eps=1e-5):
    mu = jnp.mean(z, axis=-1, keepdims=True)
    zc = z - mu
    var = jnp.mean(zc * zc, axis=-1, keepdims=True)
    return zc * lax.rsqrt(var + eps) * g + b


def _encoder_layer_kernel(x_ref, wqkv_ref, bqkv_ref, wo_ref, bo_ref,
                          ln1g_ref, ln1b_ref, w1_ref, b1_ref, w2_ref, b2_ref,
                          ln2g_ref, ln2b_ref, o_ref, *, num_heads):
    """One batch per grid step. Whole post-LN TransformerEncoderLayer fused."""
    x = x_ref[...]                                   # [S, D] f32
    S, D = x.shape
    Dh = D // num_heads
    scale = 1.0 / math.sqrt(Dh)

    # --- fused QKV projection: single [D, 3D] MXU pass ---
    qkv = (jnp.dot(x, wqkv_ref[...], preferred_element_type=jnp.float32)
           + bqkv_ref[...])                          # [S, 3D]

    # --- all heads handled in this one invocation (no per-head grid) ---
    wo = wo_ref[...]                                 # [D, D]
    attn = jnp.zeros((S, D), jnp.float32)
    for h in range(num_heads):                       # tiny H, fully unrolled
        q = qkv[:, h * Dh:(h + 1) * Dh]              # [S, Dh]
        k = qkv[:, D + h * Dh:D + (h + 1) * Dh]      # [S, Dh]
        v = qkv[:, 2 * D + h * Dh:2 * D + (h + 1) * Dh]
        # q @ k^T without materializing a transpose (contract last dims)
        s = lax.dot_general(q, k, (((1,), (1,)), ((), ())),
                            preferred_element_type=jnp.float32) * scale   # [S, S]
        m = jnp.max(s, axis=-1, keepdims=True)
        p = jnp.exp(s - m)
        p = p * pl.reciprocal(jnp.sum(p, axis=-1, keepdims=True), approx=True)
        ho = jnp.dot(p, v, preferred_element_type=jnp.float32)            # [S, Dh]
        # fold the output projection in per head: attn @ Wo == sum_h ho_h @ Wo[h]
        attn = attn + jnp.dot(ho, wo[h * Dh:(h + 1) * Dh, :],
                              preferred_element_type=jnp.float32)
    attn = attn + bo_ref[...]

    # --- residual + LayerNorm 1 (post-LN) ---
    h1 = _layernorm(x + attn, ln1g_ref[...], ln1b_ref[...])

    # --- FFN: linear -> relu -> linear, fused ---
    f = (jnp.dot(h1, w1_ref[...], preferred_element_type=jnp.float32)
         + b1_ref[...])
    f = jnp.maximum(f, 0.0)
    f = (jnp.dot(f, w2_ref[...], preferred_element_type=jnp.float32)
         + b2_ref[...])

    # --- residual + LayerNorm 2 ---
    o_ref[...] = _layernorm(h1 + f, ln2g_ref[...], ln2b_ref[...]).astype(o_ref.dtype)


def encoder_layer(x2, p, *, batch, seq, num_heads):
    """x2: [B*S, D] batch-major -> [B*S, D]; one pallas_call for the whole layer."""
    M, D = x2.shape
    F = p["w1"].shape[1]

    def wspec(shape):
        return pl.BlockSpec(shape, lambda b: (0, 0))     # resident weights

    return pl.pallas_call(
        functools.partial(_encoder_layer_kernel, num_heads=num_heads),
        out_shape=jax.ShapeDtypeStruct((M, D), jnp.float32),
        grid=(batch,),
        in_specs=[
            pl.BlockSpec((seq, D), lambda b: (b, 0)),    # one batch per step
            wspec((D, 3 * D)), wspec((1, 3 * D)),        # in_proj
            wspec((D, D)), wspec((1, D)),                # out_proj
            wspec((1, D)), wspec((1, D)),                # ln1
            wspec((D, F)), wspec((1, F)),                # linear1
            wspec((F, D)), wspec((1, D)),                # linear2
            wspec((1, D)), wspec((1, D)),                # ln2
        ],
        out_specs=pl.BlockSpec((seq, D), lambda b: (b, 0)),
        compiler_params=pltpu.CompilerParams(
            dimension_semantics=("parallel",)),          # v7x: shard batches on 2 TCs
    )(x2, p["wqkv"], p["bqkv"], p["wo"], p["bo"],
      p["ln1_g"], p["ln1_b"], p["w1"], p["b1"], p["w2"], p["b2"],
      p["ln2_g"], p["ln2_b"])


# ----------------------------- decoder head kernel -----------------------------

def _decoder_kernel(x_ref, w_ref, b_ref, o_ref):
    o_ref[...] = (jnp.dot(x_ref[...], w_ref[...], preferred_element_type=jnp.float32)
                  + b_ref[...]).astype(o_ref.dtype)


def decoder(feat, w, b):
    """feat:[B, 2D] @ w:[2D, 1] + b -> [B, 1]; single grid step (full blocks)."""
    B, K = feat.shape
    N = w.shape[1]
    return pl.pallas_call(
        _decoder_kernel,
        out_shape=jax.ShapeDtypeStruct((B, N), jnp.float32),
        grid=(1,),
        in_specs=[pl.BlockSpec((B, K), lambda i: (0, 0)),
                  pl.BlockSpec((K, N), lambda i: (0, 0)),
                  pl.BlockSpec((1, N), lambda i: (0, 0))],
        out_specs=pl.BlockSpec((B, N), lambda i: (0, 0)),
    )(feat, w, b)


# --------------------------- model (glue in JAX) ---------------------------

def make_positional_encoding(max_len, d_model):
    position = jnp.arange(max_len, dtype=jnp.float32)[:, None]
    div_term = jnp.exp(jnp.arange(0, d_model, 2, dtype=jnp.float32)
                       * (-math.log(10000.0) / d_model))
    pe = jnp.zeros((max_len, d_model), jnp.float32)
    pe = pe.at[:, 0::2].set(jnp.sin(position * div_term))
    pe = pe.at[:, 1::2].set(jnp.cos(position * div_term))
    return pe                                              # [max_len, d_model]


def transformer_forward(tokens, params, cfg):
    """tokens: int32 [S, B] -> [B, 1] (output_type='bi')."""
    S, B = tokens.shape
    D = cfg["d_model"]
    # Embedding gather + sqrt(D) scale + positional encoding, in batch-major layout.
    # TODO(synk): could be fused into the first layer kernel via scalar-prefetched
    # token ids + in-kernel gather; kept as a single XLA gather+add for robustness.
    x = params["emb"][tokens.T] * math.sqrt(D)             # [B, S, D]
    x = x + params["pe"][:S][None]                         # dropout = identity (eval)
    x2 = x.reshape(B * S, D)                               # batch-major rows
    for lp in params["layers"]:
        x2 = encoder_layer(x2, lp, batch=B, seq=S, num_heads=cfg["num_heads"])
    x3 = x2.reshape(B, S, D)
    # output_type == 'bi': decoder(cat(x[0], x[-1], dim=1))
    feat = jnp.concatenate([x3[:, 0], x3[:, -1]], axis=-1)  # [B, 2D]
    return decoder(feat, params["dec_w"], params["dec_b"])  # [B, 1]


# ------------------------------- init ---------------------------------

def init_params(key, cfg):
    D, F, H, L = cfg["d_model"], cfg["ffn_dim"], cfg["num_heads"], cfg["num_layers"]
    n_token, max_len = cfg["n_token"], cfg["max_len"]
    keys = iter(jax.random.split(key, 2 + 4 * L))

    def unif(k, shape, scale):
        return jax.random.uniform(k, shape, jnp.float32, -scale, scale)

    params = {
        "emb": unif(next(keys), (n_token, D), 0.1),          # init_weights(): U(-0.1, 0.1)
        "pe": make_positional_encoding(max_len, D),
        "dec_w": unif(next(keys), (1, 2 * D), 0.1).T,        # [2D, 1], U(-0.1, 0.1)
        "dec_b": jnp.zeros((1, 1), jnp.float32),             # decoder bias zero
        "layers": [],
    }
    for _ in range(L):
        lp = {
            # weights pre-transposed to [in, out]; biases pre-shaped [1, out]
            "wqkv": unif(next(keys), (3 * D, D), math.sqrt(6.0 / (4 * D))).T,  # [D, 3D]
            "bqkv": jnp.zeros((1, 3 * D), jnp.float32),
            "wo": unif(next(keys), (D, D), 1.0 / math.sqrt(D)).T,              # [D, D]
            "bo": jnp.zeros((1, D), jnp.float32),
            "w1": unif(next(keys), (F, D), 1.0 / math.sqrt(D)).T,              # [D, F]
            "b1": jnp.zeros((1, F), jnp.float32),
            "w2": unif(next(keys), (D, F), 1.0 / math.sqrt(F)).T,              # [F, D]
            "b2": jnp.zeros((1, D), jnp.float32),
            "ln1_g": jnp.ones((1, D), jnp.float32),
            "ln1_b": jnp.zeros((1, D), jnp.float32),
            "ln2_g": jnp.ones((1, D), jnp.float32),
            "ln2_b": jnp.zeros((1, D), jnp.float32),
        }
        params["layers"].append(lp)
    return params


# ------------------------------- main ---------------------------------

if __name__ == "__main__":
    # Small config consistent with the module (d_model divisible by num_heads).
    # TODO(synk): PyTorch default dim_feedforward is 2048; scaled to 128 for the small demo.
    cfg = dict(d_model=64, num_heads=4, num_layers=2, ffn_dim=128,
               n_token=26, max_len=100)
    S, B = 8, 2

    key = jax.random.PRNGKey(0)
    k_tok, k_par = jax.random.split(key)
    tokens = jax.random.randint(k_tok, (S, B), 0, cfg["n_token"], dtype=jnp.int32)
    params = init_params(k_par, cfg)

    fwd = jax.jit(lambda t, p: transformer_forward(t, p, cfg))
    out = jax.block_until_ready(fwd(tokens, params))
    assert out.shape == (B, 1) and out.dtype == jnp.float32
    assert bool(jnp.all(jnp.isfinite(out)))
    print("KERNEL_OK")
</pallas_src>

<mosaic_0001>
module attributes {stable_mosaic.version = 11 : i64} {
  func.func @_decoder_kernel(%arg0: i32, %arg1: memref<2x128xf32, #tpu.memory_space<vmem>>, %arg2: memref<128x1xf32, #tpu.memory_space<vmem>>, %arg3: memref<1x1xf32, #tpu.memory_space<vmem>>, %arg4: memref<2x1xf32, #tpu.memory_space<vmem>>) attributes {dimension_semantics = [#tpu.dimension_semantics<arbitrary>], iteration_bounds = array<i64: 1>, scalar_prefetch = 0 : i64, scratch_operands = 0 : i64, tpu.core_type = #tpu.core_type<tc>, window_params = [{pipeline_mode = #tpu.pipeline_mode<synchronous>, transform_indices = @transform_0, window_bounds = array<i64: 2, 128>}, {pipeline_mode = #tpu.pipeline_mode<synchronous>, transform_indices = @transform_1, window_bounds = array<i64: 128, 1>}, {pipeline_mode = #tpu.pipeline_mode<synchronous>, transform_indices = @transform_2, window_bounds = array<i64: 1, 1>}, {pipeline_mode = #tpu.pipeline_mode<synchronous>, transform_indices = @transform_3, window_bounds = array<i64: 2, 1>}]} {
    %c0 = arith.constant 0 : index
    %c0_0 = arith.constant 0 : index
    %0 = vector.load %arg1[%c0, %c0_0] : memref<2x128xf32, #tpu.memory_space<vmem>>, vector<2x128xf32>
    %c0_1 = arith.constant 0 : index
    %c0_2 = arith.constant 0 : index
    %1 = vector.load %arg2[%c0_1, %c0_2] : memref<128x1xf32, #tpu.memory_space<vmem>>, vector<128x1xf32>
    %cst = arith.constant dense<0.000000e+00> : vector<2x1xf32>
    %2 = tpu.matmul %0, %1, %cst {dimension_numbers = #tpu.dot_dimension_numbers<[1], [0], [0], [1], [0, 0, 1, 1], [], []>} : vector<2x128xf32>, vector<128x1xf32>, vector<2x1xf32> -> vector<2x1xf32>
    %c0_3 = arith.constant 0 : index
    %c0_4 = arith.constant 0 : index
    %3 = vector.load %arg3[%c0_3, %c0_4] : memref<1x1xf32, #tpu.memory_space<vmem>>, vector<1x1xf32>
    %4 = vector.broadcast %3 : vector<1x1xf32> to vector<2x1xf32>
    %5 = arith.addf %2, %4 : vector<2x1xf32>
    %c0_5 = arith.constant 0 : index
    %c0_6 = arith.constant 0 : index
    %6 = vector.load %arg4[%c0_5, %c0_6] : memref<2x1xf32, #tpu.memory_space<vmem>>, vector<2x1xf32>
    tpu.vector_store %arg4[%c0_5, %c0_6], %5 {strides = array<i32>} : memref<2x1xf32, #tpu.memory_space<vmem>>, vector<2x1xf32>,
    return
  }
  func.func @transform_0(%arg0: i32) -> (i32, i32) {
    %c0_i32 = arith.constant 0 : i32
    %c0_i32_0 = arith.constant 0 : i32
    %c0_i32_1 = arith.constant 0 : i32
    return %c0_i32, %c0_i32_0 : i32, i32
  }
  func.func @transform_1(%arg0: i32) -> (i32, i32) {
    %c0_i32 = arith.constant 0 : i32
    %c0_i32_0 = arith.constant 0 : i32
    %c0_i32_1 = arith.constant 0 : i32
    return %c0_i32, %c0_i32_0 : i32, i32
  }
  func.func @transform_2(%arg0: i32) -> (i32, i32) {
    %c0_i32 = arith.constant 0 : i32
    %c0_i32_0 = arith.constant 0 : i32
    %c0_i32_1 = arith.constant 0 : i32
    return %c0_i32, %c0_i32_0 : i32, i32
  }
  func.func @transform_3(%arg0: i32) -> (i32, i32) {
    %c0_i32 = arith.constant 0 : i32
    %c0_i32_0 = arith.constant 0 : i32
    %c0_i32_1 = arith.constant 0 : i32
    return %c0_i32, %c0_i32_0 : i32, i32
  }
}

module attributes {stable_mosaic.version = 11 : i64} {
  func.func @_encoder_layer_kernel(%arg0: i32, %arg1: memref<8x64xf32, #tpu.memory_space<vmem>>, %arg2: memref<64x192xf32, #tpu.memory_space<vmem>>, %arg3: memref<1x192xf32, #tpu.memory_space<vmem>>, %arg4: memref<64x64xf32, #tpu.memory_space<vmem>>, %arg5: memref<1x64xf32, #tpu.memory_space<vmem>>, %arg6: memref<1x64xf32, #tpu.memory_space<vmem>>, %arg7: memref<1x64xf32, #tpu.memory_space<vmem>>, %arg8: memref<64x128xf32, #tpu.memory_space<vmem>>, %arg9: memref<1x128xf32, #tpu.memory_space<vmem>>, %arg10: memref<128x64xf32, #tpu.memory_space<vmem>>, %arg11: memref<1x64xf32, #tpu.memory_space<vmem>>, %arg12: memref<1x64xf32, #tpu.memory_space<vmem>>, %arg13: memref<1x64xf32, #tpu.memory_space<vmem>>, %arg14: memref<8x64xf32, #tpu.memory_space<vmem>>) attributes {dimension_semantics = [#tpu.dimension_semantics<parallel>], iteration_bounds = array<i64: 2>, scalar_prefetch = 0 : i64, scratch_operands = 0 : i64, tpu.core_type = #tpu.core_type<tc>, window_params = [{transform_indices = @transform_0, window_bounds = array<i64: 8, 64>}, {pipeline_mode = #tpu.pipeline_mode<synchronous>, transform_indices = @transform_1, window_bounds = array<i64: 64, 192>}, {pipeline_mode = #tpu.pipeline_mode<synchronous>, transform_indices = @transform_2, window_bounds = array<i64: 1, 192>}, {pipeline_mode = #tpu.pipeline_mode<synchronous>, transform_indices = @transform_3, window_bounds = array<i64: 64, 64>}, {pipeline_mode = #tpu.pipeline_mode<synchronous>, transform_indices = @transform_4, window_bounds = array<i64: 1, 64>}, {pipeline_mode = #tpu.pipeline_mode<synchronous>, transform_indices = @transform_5, window_bounds = array<i64: 1, 64>}, {pipeline_mode = #tpu.pipeline_mode<synchronous>, transform_indices = @transform_6, window_bounds = array<i64: 1, 64>}, {pipeline_mode = #tpu.pipeline_mode<synchronous>, transform_indices = @transform_7, window_bounds = array<i64: 64, 128>}, {pipeline_mode = #tpu.pipeline_mode<synchronous>, transform_indices = @transform_8, window_bounds = array<i64: 1, 128>}, {pipeline_mode = #tpu.pipeline_mode<synchronous>, transform_indices = @transform_9, window_bounds = array<i64: 128, 64>}, {pipeline_mode = #tpu.pipeline_mode<synchronous>, transform_indices = @transform_10, window_bounds = array<i64: 1, 64>}, {pipeline_mode = #tpu.pipeline_mode<synchronous>, transform_indices = @transform_11, window_bounds = array<i64: 1, 64>}, {pipeline_mode = #tpu.pipeline_mode<synchronous>, transform_indices = @transform_12, window_bounds = array<i64: 1, 64>}, {transform_indices = @transform_13, window_bounds = array<i64: 8, 64>}]} {
    %c0 = arith.constant 0 : index
    %c0_0 = arith.constant 0 : index
    %0 = vector.load %arg1[%c0, %c0_0] : memref<8x64xf32, #tpu.memory_space<vmem>>, vector<8x64xf32>
    %c0_1 = arith.constant 0 : index
    %c0_2 = arith.constant 0 : index
    %1 = vector.load %arg2[%c0_1, %c0_2] : memref<64x192xf32, #tpu.memory_space<vmem>>, vector<64x192xf32>
    %cst = arith.constant dense<0.000000e+00> : vector<8x192xf32>
    %2 = tpu.matmul %0, %1, %cst {dimension_numbers = #tpu.dot_dimension_numbers<[1], [0], [0], [1], [0, 0, 1, 1], [], []>} : vector<8x64xf32>, vector<64x192xf32>, vector<8x192xf32> -> vector<8x192xf32>
    %c0_3 = arith.constant 0 : index
    %c0_4 = arith.constant 0 : index
    %3 = vector.load %arg3[%c0_3, %c0_4] : memref<1x192xf32, #tpu.memory_space<vmem>>, vector<1x192xf32>
    %4 = vector.broadcast %3 : vector<1x192xf32> to vector<8x192xf32>
    %5 = arith.addf %2, %4 : vector<8x192xf32>
    %c0_5 = arith.constant 0 : index
    %c0_6 = arith.constant 0 : index
    %6 = vector.load %arg4[%c0_5, %c0_6] : memref<64x64xf32, #tpu.memory_space<vmem>>, vector<64x64xf32>
    %cst_7 = arith.constant 0.000000e+00 : f32
    %7 = vector.broadcast %cst_7 : f32 to vector<8x64xf32>
    %8 = vector.extract_strided_slice %5 {offsets = [0, 0], sizes = [8, 16], strides = [1, 1]} : vector<8x192xf32> to vector<8x16xf32>
    %9 = vector.extract_strided_slice %5 {offsets = [0, 64], sizes = [8, 16], strides = [1, 1]} : vector<8x192xf32> to vector<8x16xf32>
    %10 = vector.extract_strided_slice %5 {offsets = [0, 128], sizes = [8, 16], strides = [1, 1]} : vector<8x192xf32> to vector<8x16xf32>
    %cst_8 = arith.constant dense<0.000000e+00> : vector<8x8xf32>
    %11 = tpu.matmul %8, %9, %cst_8 {dimension_numbers = #tpu.dot_dimension_numbers<[1], [1], [0], [0], [0, 0, 1, 0], [], []>} : vector<8x16xf32>, vector<8x16xf32>, vector<8x8xf32> -> vector<8x8xf32>
    %cst_9 = arith.constant 2.500000e-01 : f32
    %12 = vector.broadcast %cst_9 : f32 to vector<8x8xf32>
    %13 = arith.mulf %11, %12 : vector<8x8xf32>
    %cst_10 = arith.constant dense<0xFF800000> : vector<8xf32>
    %14 = vector.multi_reduction <maximumf>, %13, %cst_10 [1] : vector<8x8xf32> to vector<8xf32>
    %15 = vector.shape_cast %14 : vector<8xf32> to vector<8x1xf32>
    %16 = vector.broadcast %15 : vector<8x1xf32> to vector<8x8xf32>
    %17 = arith.subf %13, %16 : vector<8x8xf32>
    %18 = math.exp %17 : vector<8x8xf32>
    %cst_11 = arith.constant dense<0.000000e+00> : vector<8xf32>
    %19 = vector.multi_reduction <add>, %18, %cst_11 [1] : vector<8x8xf32> to vector<8xf32>
    %20 = vector.shape_cast %19 : vector<8xf32> to vector<8x1xf32>
    %21 = tpu.reciprocal %20 {approx = true} : vector<8x1xf32> -> vector<8x1xf32>
    %22 = vector.broadcast %21 : vector<8x1xf32> to vector<8x8xf32>
    %23 = arith.mulf %18, %22 : vector<8x8xf32>
    %cst_12 = arith.constant dense<0.000000e+00> : vector<8x16xf32>
    %24 = tpu.matmul %23, %10, %cst_12 {dimension_numbers = #tpu.dot_dimension_numbers<[1], [0], [0], [1], [0, 0, 1, 1], [], []>} : vector<8x8xf32>, vector<8x16xf32>, vector<8x16xf32> -> vector<8x16xf32>
    %25 = vector.extract_strided_slice %6 {offsets = [0, 0], sizes = [16, 64], strides = [1, 1]} : vector<64x64xf32> to vector<16x64xf32>
    %cst_13 = arith.constant dense<0.000000e+00> : vector<8x64xf32>
    %26 = tpu.matmul %24, %25, %cst_13 {dimension_numbers = #tpu.dot_dimension_numbers<[1], [0], [0], [1], [0, 0, 1, 1], [], []>} : vector<8x16xf32>, vector<16x64xf32>, vector<8x64xf32> -> vector<8x64xf32>
    %27 = arith.addf %7, %26 : vector<8x64xf32>
    %28 = vector.extract_strided_slice %5 {offsets = [0, 16], sizes = [8, 16], strides = [1, 1]} : vector<8x192xf32> to vector<8x16xf32>
    %29 = vector.extract_strided_slice %5 {offsets = [0, 80], sizes = [8, 16], strides = [1, 1]} : vector<8x192xf32> to vector<8x16xf32>
    %30 = vector.extract_strided_slice %5 {offsets = [0, 144], sizes = [8, 16], strides = [1, 1]} : vector<8x192xf32> to vector<8x16xf32>
    %cst_14 = arith.constant dense<0.000000e+00> : vector<8x8xf32>
    %31 = tpu.matmul %28, %29, %cst_14 {dimension_numbers = #tpu.dot_dimension_numbers<[1], [1], [0], [0], [0, 0, 1, 0], [], []>} : vector<8x16xf32>, vector<8x16xf32>, vector<8x8xf32> -> vector<8x8xf32>
    %cst_15 = arith.constant 2.500000e-01 : f32
    %32 = vector.broadcast %cst_15 : f32 to vector<8x8xf32>
    %33 = arith.mulf %31, %32 : vector<8x8xf32>
    %cst_16 = arith.constant dense<0xFF800000> : vector<8xf32>
    %34 = vector.multi_reduction <maximumf>, %33, %cst_16 [1] : vector<8x8xf32> to vector<8xf32>
    %35 = vector.shape_cast %34 : vector<8xf32> to vector<8x1xf32>
    %36 = vector.broadcast %35 : vector<8x1xf32> to vector<8x8xf32>
    %37 = arith.subf %33, %36 : vector<8x8xf32>
    %38 = math.exp %37 : vector<8x8xf32>
    %cst_17 = arith.constant dense<0.000000e+00> : vector<8xf32>
    %39 = vector.multi_reduction <add>, %38, %cst_17 [1] : vector<8x8xf32> to vector<8xf32>
    %40 = vector.shape_cast %39 : vector<8xf32> to vector<8x1xf32>
    %41 = tpu.reciprocal %40 {approx = true} : vector<8x1xf32> -> vector<8x1xf32>
    %42 = vector.broadcast %41 : vector<8x1xf32> to vector<8x8xf32>
    %43 = arith.mulf %38, %42 : vector<8x8xf32>
    %cst_18 = arith.constant dense<0.000000e+00> : vector<8x16xf32>
    %44 = tpu.matmul %43, %30, %cst_18 {dimension_numbers = #tpu.dot_dimension_numbers<[1], [0], [0], [1], [0, 0, 1, 1], [], []>} : vector<8x8xf32>, vector<8x16xf32>, vector<8x16xf32> -> vector<8x16xf32>
    %45 = vector.extract_strided_slice %6 {offsets = [16, 0], sizes = [16, 64], strides = [1, 1]} : vector<64x64xf32> to vector<16x64xf32>
    %cst_19 = arith.constant dense<0.000000e+00> : vector<8x64xf32>
    %46 = tpu.matmul %44, %45, %cst_19 {dimension_numbers = #tpu.dot_dimension_numbers<[1], [0], [0], [1], [0, 0, 1, 1], [], []>} : vector<8x16xf32>, vector<16x64xf32>, vector<8x64xf32> -> vector<8x64xf32>
    %47 = arith.addf %27, %46 : vector<8x64xf32>
    %48 = vector.extract_strided_slice %5 {offsets = [0, 32], sizes = [8, 16], strides = [1, 1]} : vector<8x192xf32> to vector<8x16xf32>
    %49 = vector.extract_strided_slice %5 {offsets = [0, 96], sizes = [8, 16], strides = [1, 1]} : vector<8x192xf32> to vector<8x16xf32>
    %50 = vector.extract_strided_slice %5 {offsets = [0, 160], sizes = [8, 16], strides = [1, 1]} : vector<8x192xf32> to vector<8x16xf32>
    %cst_20 = arith.constant dense<0.000000e+00> : vector<8x8xf32>
    %51 = tpu.matmul %48, %49, %cst_20 {dimension_numbers = #tpu.dot_dimension_numbers<[1], [1], [0], [0], [0, 0, 1, 0], [], []>} : vector<8x16xf32>, vector<8x16xf32>, vector<8x8xf32> -> vector<8x8xf32>
    %cst_21 = arith.constant 2.500000e-01 : f32
    %52 = vector.broadcast %cst_21 : f32 to vector<8x8xf32>
    %53 = arith.mulf %51, %52 : vector<8x8xf32>
    %cst_22 = arith.constant dense<0xFF800000> : vector<8xf32>
    %54 = vector.multi_reduction <maximumf>, %53, %cst_22 [1] : vector<8x8xf32> to vector<8xf32>
    %55 = vector.shape_cast %54 : vector<8xf32> to vector<8x1xf32>
    %56 = vector.broadcast %55 : vector<8x1xf32> to vector<8x8xf32>
    %57 = arith.subf %53, %56 : vector<8x8xf32>
    %58 = math.exp %57 : vector<8x8xf32>
    %cst_23 = arith.constant dense<0.000000e+00> : vector<8xf32>
    %59 = vector.multi_reduction <add>, %58, %cst_23 [1] : vector<8x8xf32> to vector<8xf32>
    %60 = vector.shape_cast %59 : vector<8xf32> to vector<8x1xf32>
    %61 = tpu.reciprocal %60 {approx = true} : vector<8x1xf32> -> vector<8x1xf32>
    %62 = vector.broadcast %61 : vector<8x1xf32> to vector<8x8xf32>
    %63 = arith.mulf %58, %62 : vector<8x8xf32>
    %cst_24 = arith.constant dense<0.000000e+00> : vector<8x16xf32>
    %64 = tpu.matmul %63, %50, %cst_24 {dimension_numbers = #tpu.dot_dimension_numbers<[1], [0], [0], [1], [0, 0, 1, 1], [], []>} : vector<8x8xf32>, vector<8x16xf32>, vector<8x16xf32> -> vector<8x16xf32>
    %65 = vector.extract_strided_slice %6 {offsets = [32, 0], sizes = [16, 64], strides = [1, 1]} : vector<64x64xf32> to vector<16x64xf32>
    %cst_25 = arith.constant dense<0.000000e+00> : vector<8x64xf32>
    %66 = tpu.matmul %64, %65, %cst_25 {dimension_numbers = #tpu.dot_dimension_numbers<[1], [0], [0], [1], [0, 0, 1, 1], [], []>} : vector<8x16xf32>, vector<16x64xf32>, vector<8x64xf32> -> vector<8x64xf32>
    %67 = arith.addf %47, %66 : vector<8x64xf32>
    %68 = vector.extract_strided_slice %5 {offsets = [0, 48], sizes = [8, 16], strides = [1, 1]} : vector<8x192xf32> to vector<8x16xf32>
    %69 = vector.extract_strided_slice %5 {offsets = [0, 112], sizes = [8, 16], strides = [1, 1]} : vector<8x192xf32> to vector<8x16xf32>
    %70 = vector.extract_strided_slice %5 {offsets = [0, 176], sizes = [8, 16], strides = [1, 1]} : vector<8x192xf32> to vector<8x16xf32>
    %cst_26 = arith.constant dense<0.000000e+00> : vector<8x8xf32>
    %71 = tpu.matmul %68, %69, %cst_26 {dimension_numbers = #tpu.dot_dimension_numbers<[1], [1], [0], [0], [0, 0, 1, 0], [], []>} : vector<8x16xf32>, vector<8x16xf32>, vector<8x8xf32> -> vector<8x8xf32>
    %cst_27 = arith.constant 2.500000e-01 : f32
    %72 = vector.broadcast %cst_27 : f32 to vector<8x8xf32>
    %73 = arith.mulf %71, %72 : vector<8x8xf32>
    %cst_28 = arith.constant dense<0xFF800000> : vector<8xf32>
    %74 = vector.multi_reduction <maximumf>, %73, %cst_28 [1] : vector<8x8xf32> to vector<8xf32>
    %75 = vector.shape_cast %74 : vector<8xf32> to vector<8x1xf32>
    %76 = vector.broadcast %75 : vector<8x1xf32> to vector<8x8xf32>
    %77 = arith.subf %73, %76 : vector<8x8xf32>
    %78 = math.exp %77 : vector<8x8xf32>
    %cst_29 = arith.constant dense<0.000000e+00> : vector<8xf32>
    %79 = vector.multi_reduction <add>, %78, %cst_29 [1] : vector<8x8xf32> to vector<8xf32>
    %80 = vector.shape_cast %79 : vector<8xf32> to vector<8x1xf32>
    %81 = tpu.reciprocal %80 {approx = true} : vector<8x1xf32> -> vector<8x1xf32>
    %82 = vector.broadcast %81 : vector<8x1xf32> to vector<8x8xf32>
    %83 = arith.mulf %78, %82 : vector<8x8xf32>
    %cst_30 = arith.constant dense<0.000000e+00> : vector<8x16xf32>
    %84 = tpu.matmul %83, %70, %cst_30 {dimension_numbers = #tpu.dot_dimension_numbers<[1], [0], [0], [1], [0, 0, 1, 1], [], []>} : vector<8x8xf32>, vector<8x16xf32>, vector<8x16xf32> -> vector<8x16xf32>
    %85 = vector.extract_strided_slice %6 {offsets = [48, 0], sizes = [16, 64], strides = [1, 1]} : vector<64x64xf32> to vector<16x64xf32>
    %cst_31 = arith.constant dense<0.000000e+00> : vector<8x64xf32>
    %86 = tpu.matmul %84, %85, %cst_31 {dimension_numbers = #tpu.dot_dimension_numbers<[1], [0], [0], [1], [0, 0, 1, 1], [], []>} : vector<8x16xf32>, vector<16x64xf32>, vector<8x64xf32> -> vector<8x64xf32>
    %87 = arith.addf %67, %86 : vector<8x64xf32>
    %c0_32 = arith.constant 0 : index
    %c0_33 = arith.constant 0 : index
    %88 = vector.load %arg5[%c0_32, %c0_33] : memref<1x64xf32, #tpu.memory_space<vmem>>, vector<1x64xf32>
    %89 = vector.broadcast %88 : vector<1x64xf32> to vector<8x64xf32>
    %90 = arith.addf %87, %89 : vector<8x64xf32>
    %91 = arith.addf %0, %90 : vector<8x64xf32>
    %c0_34 = arith.constant 0 : index
    %c0_35 = arith.constant 0 : index
    %92 = vector.load %arg6[%c0_34, %c0_35] : memref<1x64xf32, #tpu.memory_space<vmem>>, vector<1x64xf32>
    %c0_36 = arith.constant 0 : index
    %c0_37 = arith.constant 0 : index
    %93 = vector.load %arg7[%c0_36, %c0_37] : memref<1x64xf32, #tpu.memory_space<vmem>>, vector<1x64xf32>
    %cst_38 = arith.constant dense<0.000000e+00> : vector<8xf32>
    %94 = vector.multi_reduction <add>, %91, %cst_38 [1] : vector<8x64xf32> to vector<8xf32>
    %95 = vector.shape_cast %94 : vector<8xf32> to vector<8x1xf32>
    %cst_39 = arith.constant 6.400000e+01 : f32
    %96 = vector.broadcast %cst_39 : f32 to vector<8x1xf32>
    %97 = arith.divf %95, %96 : vector<8x1xf32>
    %98 = vector.broadcast %97 : vector<8x1xf32> to vector<8x64xf32>
    %99 = arith.subf %91, %98 : vector<8x64xf32>
    %100 = arith.mulf %99, %99 : vector<8x64xf32>
    %cst_40 = arith.constant dense<0.000000e+00> : vector<8xf32>
    %101 = vector.multi_reduction <add>, %100, %cst_40 [1] : vector<8x64xf32> to vector<8xf32>
    %102 = vector.shape_cast %101 : vector<8xf32> to vector<8x1xf32>
    %cst_41 = arith.constant 6.400000e+01 : f32
    %103 = vector.broadcast %cst_41 : f32 to vector<8x1xf32>
    %104 = arith.divf %102, %103 : vector<8x1xf32>
    %cst_42 = arith.constant 9.99999974E-6 : f32
    %105 = vector.broadcast %cst_42 : f32 to vector<8x1xf32>
    %106 = arith.addf %104, %105 : vector<8x1xf32>
    %107 = math.rsqrt %106 : vector<8x1xf32>
    %108 = vector.broadcast %107 : vector<8x1xf32> to vector<8x64xf32>
    %109 = arith.mulf %99, %108 : vector<8x64xf32>
    %110 = vector.broadcast %92 : vector<1x64xf32> to vector<8x64xf32>
    %111 = arith.mulf %109, %110 : vector<8x64xf32>
    %112 = vector.broadcast %93 : vector<1x64xf32> to vector<8x64xf32>
    %113 = arith.addf %111, %112 : vector<8x64xf32>
    %c0_43 = arith.constant 0 : index
    %c0_44 = arith.constant 0 : index
    %114 = vector.load %arg8[%c0_43, %c0_44] : memref<64x128xf32, #tpu.memory_space<vmem>>, vector<64x128xf32>
    %cst_45 = arith.constant dense<0.000000e+00> : vector<8x128xf32>
    %115 = tpu.matmul %113, %114, %cst_45 {dimension_numbers = #tpu.dot_dimension_numbers<[1], [0], [0], [1], [0, 0, 1, 1], [], []>} : vector<8x64xf32>, vector<64x128xf32>, vector<8x128xf32> -> vector<8x128xf32>
    %c0_46 = arith.constant 0 : index
    %c0_47 = arith.constant 0 : index
    %116 = vector.load %arg9[%c0_46, %c0_47] : memref<1x128xf32, #tpu.memory_space<vmem>>, vector<1x128xf32>
    %117 = vector.broadcast %116 : vector<1x128xf32> to vector<8x128xf32>
    %118 = arith.addf %115, %117 : vector<8x128xf32>
    %cst_48 = arith.constant 0.000000e+00 : f32
    %119 = vector.broadcast %cst_48 : f32 to vector<8x128xf32>
    %120 = arith.maximumf %118, %119 : vector<8x128xf32>
    %c0_49 = arith.constant 0 : index
    %c0_50 = arith.constant 0 : index
    %121 = vector.load %arg10[%c0_49, %c0_50] : memref<128x64xf32, #tpu.memory_space<vmem>>, vector<128x64xf32>
    %cst_51 = arith.constant dense<0.000000e+00> : vector<8x64xf32>
    %122 = tpu.matmul %120, %121, %cst_51 {dimension_numbers = #tpu.dot_dimension_numbers<[1], [0], [0], [1], [0, 0, 1, 1], [], []>} : vector<8x128xf32>, vector<128x64xf32>, vector<8x64xf32> -> vector<8x64xf32>
    %c0_52 = arith.constant 0 : index
    %c0_53 = arith.constant 0 : index
    %123 = vector.load %arg11[%c0_52, %c0_53] : memref<1x64xf32, #tpu.memory_space<vmem>>, vector<1x64xf32>
    %124 = vector.broadcast %123 : vector<1x64xf32> to vector<8x64xf32>
    %125 = arith.addf %122, %124 : vector<8x64xf32>
    %126 = arith.addf %113, %125 : vector<8x64xf32>
    %c0_54 = arith.constant 0 : index
    %c0_55 = arith.constant 0 : index
    %127 = vector.load %arg12[%c0_54, %c0_55] : memref<1x64xf32, #tpu.memory_space<vmem>>, vector<1x64xf32>
    %c0_56 = arith.constant 0 : index
    %c0_57 = arith.constant 0 : index
    %128 = vector.load %arg13[%c0_56, %c0_57] : memref<1x64xf32, #tpu.memory_space<vmem>>, vector<1x64xf32>
    %cst_58 = arith.constant dense<0.000000e+00> : vector<8xf32>
    %129 = vector.multi_reduction <add>, %126, %cst_58 [1] : vector<8x64xf32> to vector<8xf32>
    %130 = vector.shape_cast %129 : vector<8xf32> to vector<8x1xf32>
    %cst_59 = arith.constant 6.400000e+01 : f32
    %131 = vector.broadcast %cst_59 : f32 to vector<8x1xf32>
    %132 = arith.divf %130, %131 : vector<8x1xf32>
    %133 = vector.broadcast %132 : vector<8x1xf32> to vector<8x64xf32>
    %134 = arith.subf %126, %133 : vector<8x64xf32>
    %135 = arith.mulf %134, %134 : vector<8x64xf32>
    %cst_60 = arith.constant dense<0.000000e+00> : vector<8xf32>
    %136 = vector.multi_reduction <add>, %135, %cst_60 [1] : vector<8x64xf32> to vector<8xf32>
    %137 = vector.shape_cast %136 : vector<8xf32> to vector<8x1xf32>
    %cst_61 = arith.constant 6.400000e+01 : f32
    %138 = vector.broadcast %cst_61 : f32 to vector<8x1xf32>
    %139 = arith.divf %137, %138 : vector<8x1xf32>
    %cst_62 = arith.constant 9.99999974E-6 : f32
    %140 = vector.broadcast %cst_62 : f32 to vector<8x1xf32>
    %141 = arith.addf %139, %140 : vector<8x1xf32>
    %142 = math.rsqrt %141 : vector<8x1xf32>
    %143 = vector.broadcast %142 : vector<8x1xf32> to vector<8x64xf32>
    %144 = arith.mulf %134, %143 : vector<8x64xf32>
    %145 = vector.broadcast %127 : vector<1x64xf32> to vector<8x64xf32>
    %146 = arith.mulf %144, %145 : vector<8x64xf32>
    %147 = vector.broadcast %128 : vector<1x64xf32> to vector<8x64xf32>
    %148 = arith.addf %146, %147 : vector<8x64xf32>
    %c0_63 = arith.constant 0 : index
    %c0_64 = arith.constant 0 : index
    %149 = vector.load %arg14[%c0_63, %c0_64] : memref<8x64xf32, #tpu.memory_space<vmem>>, vector<8x64xf32>
    tpu.vector_store %arg14[%c0_63, %c0_64], %148 {strides = array<i32>} : memref<8x64xf32, #tpu.memory_space<vmem>>, vector<8x64xf32>,
    return
  }
  func.func @transform_0(%arg0: i32) -> (i32, i32) {
    %c0_i32 = arith.constant 0 : i32
    %c0_i32_0 = arith.constant 0 : i32
    return %arg0, %c0_i32 : i32, i32
  }
  func.func @transform_1(%arg0: i32) -> (i32, i32) {
    %c0_i32 = arith.constant 0 : i32
    %c0_i32_0 = arith.constant 0 : i32
    %c0_i32_1 = arith.constant 0 : i32
    return %c0_i32, %c0_i32_0 : i32, i32
  }
  func.func @transform_2(%arg0: i32) -> (i32, i32) {
    %c0_i32 = arith.constant 0 : i32
    %c0_i32_0 = arith.constant 0 : i32
    %c0_i32_1 = arith.constant 0 : i32
    return %c0_i32, %c0_i32_0 : i32, i32
  }
  func.func @transform_3(%arg0: i32) -> (i32, i32) {
    %c0_i32 = arith.constant 0 : i32
    %c0_i32_0 = arith.constant 0 : i32
    %c0_i32_1 = arith.constant 0 : i32
    return %c0_i32, %c0_i32_0 : i32, i32
  }
  func.func @transform_4(%arg0: i32) -> (i32, i32) {
    %c0_i32 = arith.constant 0 : i32
    %c0_i32_0 = arith.constant 0 : i32
    %c0_i32_1 = arith.constant 0 : i32
    return %c0_i32, %c0_i32_0 : i32, i32
  }
  func.func @transform_5(%arg0: i32) -> (i32, i32) {
    %c0_i32 = arith.constant 0 : i32
    %c0_i32_0 = arith.constant 0 : i32
    %c0_i32_1 = arith.constant 0 : i32
    return %c0_i32, %c0_i32_0 : i32, i32
  }
  func.func @transform_6(%arg0: i32) -> (i32, i32) {
    %c0_i32 = arith.constant 0 : i32
    %c0_i32_0 = arith.constant 0 : i32
    %c0_i32_1 = arith.constant 0 : i32
    return %c0_i32, %c0_i32_0 : i32, i32
  }
  func.func @transform_7(%arg0: i32) -> (i32, i32) {
    %c0_i32 = arith.constant 0 : i32
    %c0_i32_0 = arith.constant 0 : i32
    %c0_i32_1 = arith.constant 0 : i32
    return %c0_i32, %c0_i32_0 : i32, i32
  }
  func.func @transform_8(%arg0: i32) -> (i32, i32) {
    %c0_i32 = arith.constant 0 : i32
    %c0_i32_0 = arith.constant 0 : i32
    %c0_i32_1 = arith.constant 0 : i32
    return %c0_i32, %c0_i32_0 : i32, i32
  }
  func.func @transform_9(%arg0: i32) -> (i32, i32) {
    %c0_i32 = arith.constant 0 : i32
    %c0_i32_0 = arith.constant 0 : i32
    %c0_i32_1 = arith.constant 0 : i32
    return %c0_i32, %c0_i32_0 : i32, i32
  }
  func.func @transform_10(%arg0: i32) -> (i32, i32) {
    %c0_i32 = arith.constant 0 : i32
    %c0_i32_0 = arith.constant 0 : i32
    %c0_i32_1 = arith.constant 0 : i32
    return %c0_i32, %c0_i32_0 : i32, i32
  }
  func.func @transform_11(%arg0: i32) -> (i32, i32) {
    %c0_i32 = arith.constant 0 : i32
    %c0_i32_0 = arith.constant 0 : i32
    %c0_i32_1 = arith.constant 0 : i32
    return %c0_i32, %c0_i32_0 : i32, i32
  }
  func.func @transform_12(%arg0: i32) -> (i32, i32) {
    %c0_i32 = arith.constant 0 : i32
    %c0_i32_0 = arith.constant 0 : i32
    %c0_i32_1 = arith.constant 0 : i32
    return %c0_i32, %c0_i32_0 : i32, i32
  }
  func.func @transform_13(%arg0: i32) -> (i32, i32) {
    %c0_i32 = arith.constant 0 : i32
    %c0_i32_0 = arith.constant 0 : i32
    return %arg0, %c0_i32 : i32, i32
  }
}

module attributes {stable_mosaic.version = 11 : i64} {
  func.func @_encoder_layer_kernel(%arg0: i32, %arg1: memref<8x64xf32, #tpu.memory_space<vmem>>, %arg2: memref<64x192xf32, #tpu.memory_space<vmem>>, %arg3: memref<1x192xf32, #tpu.memory_space<vmem>>, %arg4: memref<64x64xf32, #tpu.memory_space<vmem>>, %arg5: memref<1x64xf32, #tpu.memory_space<vmem>>, %arg6: memref<1x64xf32, #tpu.memory_space<vmem>>, %arg7: memref<1x64xf32, #tpu.memory_space<vmem>>, %arg8: memref<64x128xf32, #tpu.memory_space<vmem>>, %arg9: memref<1x128xf32, #tpu.memory_space<vmem>>, %arg10: memref<128x64xf32, #tpu.memory_space<vmem>>, %arg11: memref<1x64xf32, #tpu.memory_space<vmem>>, %arg12: memref<1x64xf32, #tpu.memory_space<vmem>>, %arg13: memref<1x64xf32, #tpu.memory_space<vmem>>, %arg14: memref<8x64xf32, #tpu.memory_space<vmem>>) attributes {dimension_semantics = [#tpu.dimension_semantics<parallel>], iteration_bounds = array<i64: 2>, scalar_prefetch = 0 : i64, scratch_operands = 0 : i64, tpu.core_type = #tpu.core_type<tc>, window_params = [{transform_indices = @transform_0, window_bounds = array<i64: 8, 64>}, {pipeline_mode = #tpu.pipeline_mode<synchronous>, transform_indices = @transform_1, window_bounds = array<i64: 64, 192>}, {pipeline_mode = #tpu.pipeline_mode<synchronous>, transform_indices = @transform_2, window_bounds = array<i64: 1, 192>}, {pipeline_mode = #tpu.pipeline_mode<synchronous>, transform_indices = @transform_3, window_bounds = array<i64: 64, 64>}, {pipeline_mode = #tpu.pipeline_mode<synchronous>, transform_indices = @transform_4, window_bounds = array<i64: 1, 64>}, {pipeline_mode = #tpu.pipeline_mode<synchronous>, transform_indices = @transform_5, window_bounds = array<i64: 1, 64>}, {pipeline_mode = #tpu.pipeline_mode<synchronous>, transform_indices = @transform_6, window_bounds = array<i64: 1, 64>}, {pipeline_mode = #tpu.pipeline_mode<synchronous>, transform_indices = @transform_7, window_bounds = array<i64: 64, 128>}, {pipeline_mode = #tpu.pipeline_mode<synchronous>, transform_indices = @transform_8, window_bounds = array<i64: 1, 128>}, {pipeline_mode = #tpu.pipeline_mode<synchronous>, transform_indices = @transform_9, window_bounds = array<i64: 128, 64>}, {pipeline_mode = #tpu.pipeline_mode<synchronous>, transform_indices = @transform_10, window_bounds = array<i64: 1, 64>}, {pipeline_mode = #tpu.pipeline_mode<synchronous>, transform_indices = @transform_11, window_bounds = array<i64: 1, 64>}, {pipeline_mode = #tpu.pipeline_mode<synchronous>, transform_indices = @transform_12, window_bounds = array<i64: 1, 64>}, {transform_indices = @transform_13, window_bounds = array<i64: 8, 64>}]} {
    %c0 = arith.constant 0 : index
    %c0_0 = arith.constant 0 : index
    %0 = vector.load %arg1[%c0, %c0_0] : memref<8x64xf32, #tpu.memory_space<vmem>>, vector<8x64xf32>
    %c0_1 = arith.constant 0 : index
    %c0_2 = arith.constant 0 : index
    %1 = vector.load %arg2[%c0_1, %c0_2] : memref<64x192xf32, #tpu.memory_space<vmem>>, vector<64x192xf32>
    %cst = arith.constant dense<0.000000e+00> : vector<8x192xf32>
    %2 = tpu.matmul %0, %1, %cst {dimension_numbers = #tpu.dot_dimension_numbers<[1], [0], [0], [1], [0, 0, 1, 1], [], []>} : vector<8x64xf32>, vector<64x192xf32>, vector<8x192xf32> -> vector<8x192xf32>
    %c0_3 = arith.constant 0 : index
    %c0_4 = arith.constant 0 : index
    %3 = vector.load %arg3[%c0_3, %c0_4] : memref<1x192xf32, #tpu.memory_space<vmem>>, vector<1x192xf32>
    %4 = vector.broadcast %3 : vector<1x192xf32> to vector<8x192xf32>
    %5 = arith.addf %2, %4 : vector<8x192xf32>
    %c0_5 = arith.constant 0 : index
    %c0_6 = arith.constant 0 : index
    %6 = vector.load %arg4[%c0_5, %c0_6] : memref<64x64xf32, #tpu.memory_space<vmem>>, vector<64x64xf32>
    %cst_7 = arith.constant 0.000000e+00 : f32
    %7 = vector.broadcast %cst_7 : f32 to vector<8x64xf32>
    %8 = vector.extract_strided_slice %5 {offsets = [0, 0], sizes = [8, 16], strides = [1, 1]} : vector<8x192xf32> to vector<8x16xf32>
    %9 = vector.extract_strided_slice %5 {offsets = [0, 64], sizes = [8, 16], strides = [1, 1]} : vector<8x192xf32> to vector<8x16xf32>
    %10 = vector.extract_strided_slice %5 {offsets = [0, 128], sizes = [8, 16], strides = [1, 1]} : vector<8x192xf32> to vector<8x16xf32>
    %cst_8 = arith.constant dense<0.000000e+00> : vector<8x8xf32>
    %11 = tpu.matmul %8, %9, %cst_8 {dimension_numbers = #tpu.dot_dimension_numbers<[1], [1], [0], [0], [0, 0, 1, 0], [], []>} : vector<8x16xf32>, vector<8x16xf32>, vector<8x8xf32> -> vector<8x8xf32>
    %cst_9 = arith.constant 2.500000e-01 : f32
    %12 = vector.broadcast %cst_9 : f32 to vector<8x8xf32>
    %13 = arith.mulf %11, %12 : vector<8x8xf32>
    %cst_10 = arith.constant dense<0xFF800000> : vector<8xf32>
    %14 = vector.multi_reduction <maximumf>, %13, %cst_10 [1] : vector<8x8xf32> to vector<8xf32>
    %15 = vector.shape_cast %14 : vector<8xf32> to vector<8x1xf32>
    %16 = vector.broadcast %15 : vector<8x1xf32> to vector<8x8xf32>
    %17 = arith.subf %13, %16 : vector<8x8xf32>
    %18 = math.exp %17 : vector<8x8xf32>
    %cst_11 = arith.constant dense<0.000000e+00> : vector<8xf32>
    %19 = vector.multi_reduction <add>, %18, %cst_11 [1] : vector<8x8xf32> to vector<8xf32>
    %20 = vector.shape_cast %19 : vector<8xf32> to vector<8x1xf32>
    %21 = tpu.reciprocal %20 {approx = true} : vector<8x1xf32> -> vector<8x1xf32>
    %22 = vector.broadcast %21 : vector<8x1xf32> to vector<8x8xf32>
    %23 = arith.mulf %18, %22 : vector<8x8xf32>
    %cst_12 = arith.constant dense<0.000000e+00> : vector<8x16xf32>
    %24 = tpu.matmul %23, %10, %cst_12 {dimension_numbers = #tpu.dot_dimension_numbers<[1], [0], [0], [1], [0, 0, 1, 1], [], []>} : vector<8x8xf32>, vector<8x16xf32>, vector<8x16xf32> -> vector<8x16xf32>
    %25 = vector.extract_strided_slice %6 {offsets = [0, 0], sizes = [16, 64], strides = [1, 1]} : vector<64x64xf32> to vector<16x64xf32>
    %cst_13 = arith.constant dense<0.000000e+00> : vector<8x64xf32>
    %26 = tpu.matmul %24, %25, %cst_13 {dimension_numbers = #tpu.dot_dimension_numbers<[1], [0], [0], [1], [0, 0, 1, 1], [], []>} : vector<8x16xf32>, vector<16x64xf32>, vector<8x64xf32> -> vector<8x64xf32>
    %27 = arith.addf %7, %26 : vector<8x64xf32>
    %28 = vector.extract_strided_slice %5 {offsets = [0, 16], sizes = [8, 16], strides = [1, 1]} : vector<8x192xf32> to vector<8x16xf32>
    %29 = vector.extract_strided_slice %5 {offsets = [0, 80], sizes = [8, 16], strides = [1, 1]} : vector<8x192xf32> to vector<8x16xf32>
    %30 = vector.extract_strided_slice %5 {offsets = [0, 144], sizes = [8, 16], strides = [1, 1]} : vector<8x192xf32> to vector<8x16xf32>
    %cst_14 = arith.constant dense<0.000000e+00> : vector<8x8xf32>
    %31 = tpu.matmul %28, %29, %cst_14 {dimension_numbers = #tpu.dot_dimension_numbers<[1], [1], [0], [0], [0, 0, 1, 0], [], []>} : vector<8x16xf32>, vector<8x16xf32>, vector<8x8xf32> -> vector<8x8xf32>
    %cst_15 = arith.constant 2.500000e-01 : f32
    %32 = vector.broadcast %cst_15 : f32 to vector<8x8xf32>
    %33 = arith.mulf %31, %32 : vector<8x8xf32>
    %cst_16 = arith.constant dense<0xFF800000> : vector<8xf32>
    %34 = vector.multi_reduction <maximumf>, %33, %cst_16 [1] : vector<8x8xf32> to vector<8xf32>
    %35 = vector.shape_cast %34 : vector<8xf32> to vector<8x1xf32>
    %36 = vector.broadcast %35 : vector<8x1xf32> to vector<8x8xf32>
    %37 = arith.subf %33, %36 : vector<8x8xf32>
    %38 = math.exp %37 : vector<8x8xf32>
    %cst_17 = arith.constant dense<0.000000e+00> : vector<8xf32>
    %39 = vector.multi_reduction <add>, %38, %cst_17 [1] : vector<8x8xf32> to vector<8xf32>
    %40 = vector.shape_cast %39 : vector<8xf32> to vector<8x1xf32>
    %41 = tpu.reciprocal %40 {approx = true} : vector<8x1xf32> -> vector<8x1xf32>
    %42 = vector.broadcast %41 : vector<8x1xf32> to vector<8x8xf32>
    %43 = arith.mulf %38, %42 : vector<8x8xf32>
    %cst_18 = arith.constant dense<0.000000e+00> : vector<8x16xf32>
    %44 = tpu.matmul %43, %30, %cst_18 {dimension_numbers = #tpu.dot_dimension_numbers<[1], [0], [0], [1], [0, 0, 1, 1], [], []>} : vector<8x8xf32>, vector<8x16xf32>, vector<8x16xf32> -> vector<8x16xf32>
    %45 = vector.extract_strided_slice %6 {offsets = [16, 0], sizes = [16, 64], strides = [1, 1]} : vector<64x64xf32> to vector<16x64xf32>
    %cst_19 = arith.constant dense<0.000000e+00> : vector<8x64xf32>
    %46 = tpu.matmul %44, %45, %cst_19 {dimension_numbers = #tpu.dot_dimension_numbers<[1], [0], [0], [1], [0, 0, 1, 1], [], []>} : vector<8x16xf32>, vector<16x64xf32>, vector<8x64xf32> -> vector<8x64xf32>
    %47 = arith.addf %27, %46 : vector<8x64xf32>
    %48 = vector.extract_strided_slice %5 {offsets = [0, 32], sizes = [8, 16], strides = [1, 1]} : vector<8x192xf32> to vector<8x16xf32>
    %49 = vector.extract_strided_slice %5 {offsets = [0, 96], sizes = [8, 16], strides = [1, 1]} : vector<8x192xf32> to vector<8x16xf32>
    %50 = vector.extract_strided_slice %5 {offsets = [0, 160], sizes = [8, 16], strides = [1, 1]} : vector<8x192xf32> to vector<8x16xf32>
    %cst_20 = arith.constant dense<0.000000e+00> : vector<8x8xf32>
    %51 = tpu.matmul %48, %49, %cst_20 {dimension_numbers = #tpu.dot_dimension_numbers<[1], [1], [0], [0], [0, 0, 1, 0], [], []>} : vector<8x16xf32>, vector<8x16xf32>, vector<8x8xf32> -> vector<8x8xf32>
    %cst_21 = arith.constant 2.500000e-01 : f32
    %52 = vector.broadcast %cst_21 : f32 to vector<8x8xf32>
    %53 = arith.mulf %51, %52 : vector<8x8xf32>
    %cst_22 = arith.constant dense<0xFF800000> : vector<8xf32>
    %54 = vector.multi_reduction <maximumf>, %53, %cst_22 [1] : vector<8x8xf32> to vector<8xf32>
    %55 = vector.shape_cast %54 : vector<8xf32> to vector<8x1xf32>
    %56 = vector.broadcast %55 : vector<8x1xf32> to vector<8x8xf32>
    %57 = arith.subf %53, %56 : vector<8x8xf32>
    %58 = math.exp %57 : vector<8x8xf32>
    %cst_23 = arith.constant dense<0.000000e+00> : vector<8xf32>
    %59 = vector.multi_reduction <add>, %58, %cst_23 [1] : vector<8x8xf32> to vector<8xf32>
    %60 = vector.shape_cast %59 : vector<8xf32> to vector<8x1xf32>
    %61 = tpu.reciprocal %60 {approx = true} : vector<8x1xf32> -> vector<8x1xf32>
    %62 = vector.broadcast %61 : vector<8x1xf32> to vector<8x8xf32>
    %63 = arith.mulf %58, %62 : vector<8x8xf32>
    %cst_24 = arith.constant dense<0.000000e+00> : vector<8x16xf32>
    %64 = tpu.matmul %63, %50, %cst_24 {dimension_numbers = #tpu.dot_dimension_numbers<[1], [0], [0], [1], [0, 0, 1, 1], [], []>} : vector<8x8xf32>, vector<8x16xf32>, vector<8x16xf32> -> vector<8x16xf32>
    %65 = vector.extract_strided_slice %6 {offsets = [32, 0], sizes = [16, 64], strides = [1, 1]} : vector<64x64xf32> to vector<16x64xf32>
    %cst_25 = arith.constant dense<0.000000e+00> : vector<8x64xf32>
    %66 = tpu.matmul %64, %65, %cst_25 {dimension_numbers = #tpu.dot_dimension_numbers<[1], [0], [0], [1], [0, 0, 1, 1], [], []>} : vector<8x16xf32>, vector<16x64xf32>, vector<8x64xf32> -> vector<8x64xf32>
    %67 = arith.addf %47, %66 : vector<8x64xf32>
    %68 = vector.extract_strided_slice %5 {offsets = [0, 48], sizes = [8, 16], strides = [1, 1]} : vector<8x192xf32> to vector<8x16xf32>
    %69 = vector.extract_strided_slice %5 {offsets = [0, 112], sizes = [8, 16], strides = [1, 1]} : vector<8x192xf32> to vector<8x16xf32>
    %70 = vector.extract_strided_slice %5 {offsets = [0, 176], sizes = [8, 16], strides = [1, 1]} : vector<8x192xf32> to vector<8x16xf32>
    %cst_26 = arith.constant dense<0.000000e+00> : vector<8x8xf32>
    %71 = tpu.matmul %68, %69, %cst_26 {dimension_numbers = #tpu.dot_dimension_numbers<[1], [1], [0], [0], [0, 0, 1, 0], [], []>} : vector<8x16xf32>, vector<8x16xf32>, vector<8x8xf32> -> vector<8x8xf32>
    %cst_27 = arith.constant 2.500000e-01 : f32
    %72 = vector.broadcast %cst_27 : f32 to vector<8x8xf32>
    %73 = arith.mulf %71, %72 : vector<8x8xf32>
    %cst_28 = arith.constant dense<0xFF800000> : vector<8xf32>
    %74 = vector.multi_reduction <maximumf>, %73, %cst_28 [1] : vector<8x8xf32> to vector<8xf32>
    %75 = vector.shape_cast %74 : vector<8xf32> to vector<8x1xf32>
    %76 = vector.broadcast %75 : vector<8x1xf32> to vector<8x8xf32>
    %77 = arith.subf %73, %76 : vector<8x8xf32>
    %78 = math.exp %77 : vector<8x8xf32>
    %cst_29 = arith.constant dense<0.000000e+00> : vector<8xf32>
    %79 = vector.multi_reduction <add>, %78, %cst_29 [1] : vector<8x8xf32> to vector<8xf32>
    %80 = vector.shape_cast %79 : vector<8xf32> to vector<8x1xf32>
    %81 = tpu.reciprocal %80 {approx = true} : vector<8x1xf32> -> vector<8x1xf32>
    %82 = vector.broadcast %81 : vector<8x1xf32> to vector<8x8xf32>
    %83 = arith.mulf %78, %82 : vector<8x8xf32>
    %cst_30 = arith.constant dense<0.000000e+00> : vector<8x16xf32>
    %84 = tpu.matmul %83, %70, %cst_30 {dimension_numbers = #tpu.dot_dimension_numbers<[1], [0], [0], [1], [0, 0, 1, 1], [], []>} : vector<8x8xf32>, vector<8x16xf32>, vector<8x16xf32> -> vector<8x16xf32>
    %85 = vector.extract_strided_slice %6 {offsets = [48, 0], sizes = [16, 64], strides = [1, 1]} : vector<64x64xf32> to vector<16x64xf32>
    %cst_31 = arith.constant dense<0.000000e+00> : vector<8x64xf32>
    %86 = tpu.matmul %84, %85, %cst_31 {dimension_numbers = #tpu.dot_dimension_numbers<[1], [0], [0], [1], [0, 0, 1, 1], [], []>} : vector<8x16xf32>, vector<16x64xf32>, vector<8x64xf32> -> vector<8x64xf32>
    %87 = arith.addf %67, %86 : vector<8x64xf32>
    %c0_32 = arith.constant 0 : index
    %c0_33 = arith.constant 0 : index
    %88 = vector.load %arg5[%c0_32, %c0_33] : memref<1x64xf32, #tpu.memory_space<vmem>>, vector<1x64xf32>
    %89 = vector.broadcast %88 : vector<1x64xf32> to vector<8x64xf32>
    %90 = arith.addf %87, %89 : vector<8x64xf32>
    %91 = arith.addf %0, %90 : vector<8x64xf32>
    %c0_34 = arith.constant 0 : index
    %c0_35 = arith.constant 0 : index
    %92 = vector.load %arg6[%c0_34, %c0_35] : memref<1x64xf32, #tpu.memory_space<vmem>>, vector<1x64xf32>
    %c0_36 = arith.constant 0 : index
    %c0_37 = arith.constant 0 : index
    %93 = vector.load %arg7[%c0_36, %c0_37] : memref<1x64xf32, #tpu.memory_space<vmem>>, vector<1x64xf32>
    %cst_38 = arith.constant dense<0.000000e+00> : vector<8xf32>
    %94 = vector.multi_reduction <add>, %91, %cst_38 [1] : vector<8x64xf32> to vector<8xf32>
    %95 = vector.shape_cast %94 : vector<8xf32> to vector<8x1xf32>
    %cst_39 = arith.constant 6.400000e+01 : f32
    %96 = vector.broadcast %cst_39 : f32 to vector<8x1xf32>
    %97 = arith.divf %95, %96 : vector<8x1xf32>
    %98 = vector.broadcast %97 : vector<8x1xf32> to vector<8x64xf32>
    %99 = arith.subf %91, %98 : vector<8x64xf32>
    %100 = arith.mulf %99, %99 : vector<8x64xf32>
    %cst_40 = arith.constant dense<0.000000e+00> : vector<8xf32>
    %101 = vector.multi_reduction <add>, %100, %cst_40 [1] : vector<8x64xf32> to vector<8xf32>
    %102 = vector.shape_cast %101 : vector<8xf32> to vector<8x1xf32>
    %cst_41 = arith.constant 6.400000e+01 : f32
    %103 = vector.broadcast %cst_41 : f32 to vector<8x1xf32>
    %104 = arith.divf %102, %103 : vector<8x1xf32>
    %cst_42 = arith.constant 9.99999974E-6 : f32
    %105 = vector.broadcast %cst_42 : f32 to vector<8x1xf32>
    %106 = arith.addf %104, %105 : vector<8x1xf32>
    %107 = math.rsqrt %106 : vector<8x1xf32>
    %108 = vector.broadcast %107 : vector<8x1xf32> to vector<8x64xf32>
    %109 = arith.mulf %99, %108 : vector<8x64xf32>
    %110 = vector.broadcast %92 : vector<1x64xf32> to vector<8x64xf32>
    %111 = arith.mulf %109, %110 : vector<8x64xf32>
    %112 = vector.broadcast %93 : vector<1x64xf32> to vector<8x64xf32>
    %113 = arith.addf %111, %112 : vector<8x64xf32>
    %c0_43 = arith.constant 0 : index
    %c0_44 = arith.constant 0 : index
    %114 = vector.load %arg8[%c0_43, %c0_44] : memref<64x128xf32, #tpu.memory_space<vmem>>, vector<64x128xf32>
    %cst_45 = arith.constant dense<0.000000e+00> : vector<8x128xf32>
    %115 = tpu.matmul %113, %114, %cst_45 {dimension_numbers = #tpu.dot_dimension_numbers<[1], [0], [0], [1], [0, 0, 1, 1], [], []>} : vector<8x64xf32>, vector<64x128xf32>, vector<8x128xf32> -> vector<8x128xf32>
    %c0_46 = arith.constant 0 : index
    %c0_47 = arith.constant 0 : index
    %116 = vector.load %arg9[%c0_46, %c0_47] : memref<1x128xf32, #tpu.memory_space<vmem>>, vector<1x128xf32>
    %117 = vector.broadcast %116 : vector<1x128xf32> to vector<8x128xf32>
    %118 = arith.addf %115, %117 : vector<8x128xf32>
    %cst_48 = arith.constant 0.000000e+00 : f32
    %119 = vector.broadcast %cst_48 : f32 to vector<8x128xf32>
    %120 = arith.maximumf %118, %119 : vector<8x128xf32>
    %c0_49 = arith.constant 0 : index
    %c0_50 = arith.constant 0 : index
    %121 = vector.load %arg10[%c0_49, %c0_50] : memref<128x64xf32, #tpu.memory_space<vmem>>, vector<128x64xf32>
    %cst_51 = arith.constant dense<0.000000e+00> : vector<8x64xf32>
    %122 = tpu.matmul %120, %121, %cst_51 {dimension_numbers = #tpu.dot_dimension_numbers<[1], [0], [0], [1], [0, 0, 1, 1], [], []>} : vector<8x128xf32>, vector<128x64xf32>, vector<8x64xf32> -> vector<8x64xf32>
    %c0_52 = arith.constant 0 : index
    %c0_53 = arith.constant 0 : index
    %123 = vector.load %arg11[%c0_52, %c0_53] : memref<1x64xf32, #tpu.memory_space<vmem>>, vector<1x64xf32>
    %124 = vector.broadcast %123 : vector<1x64xf32> to vector<8x64xf32>
    %125 = arith.addf %122, %124 : vector<8x64xf32>
    %126 = arith.addf %113, %125 : vector<8x64xf32>
    %c0_54 = arith.constant 0 : index
    %c0_55 = arith.constant 0 : index
    %127 = vector.load %arg12[%c0_54, %c0_55] : memref<1x64xf32, #tpu.memory_space<vmem>>, vector<1x64xf32>
    %c0_56 = arith.constant 0 : index
    %c0_57 = arith.constant 0 : index
    %128 = vector.load %arg13[%c0_56, %c0_57] : memref<1x64xf32, #tpu.memory_space<vmem>>, vector<1x64xf32>
    %cst_58 = arith.constant dense<0.000000e+00> : vector<8xf32>
    %129 = vector.multi_reduction <add>, %126, %cst_58 [1] : vector<8x64xf32> to vector<8xf32>
    %130 = vector.shape_cast %129 : vector<8xf32> to vector<8x1xf32>
    %cst_59 = arith.constant 6.400000e+01 : f32
    %131 = vector.broadcast %cst_59 : f32 to vector<8x1xf32>
    %132 = arith.divf %130, %131 : vector<8x1xf32>
    %133 = vector.broadcast %132 : vector<8x1xf32> to vector<8x64xf32>
    %134 = arith.subf %126, %133 : vector<8x64xf32>
    %135 = arith.mulf %134, %134 : vector<8x64xf32>
    %cst_60 = arith.constant dense<0.000000e+00> : vector<8xf32>
    %136 = vector.multi_reduction <add>, %135, %cst_60 [1] : vector<8x64xf32> to vector<8xf32>
    %137 = vector.shape_cast %136 : vector<8xf32> to vector<8x1xf32>
    %cst_61 = arith.constant 6.400000e+01 : f32
    %138 = vector.broadcast %cst_61 : f32 to vector<8x1xf32>
    %139 = arith.divf %137, %138 : vector<8x1xf32>
    %cst_62 = arith.constant 9.99999974E-6 : f32
    %140 = vector.broadcast %cst_62 : f32 to vector<8x1xf32>
    %141 = arith.addf %139, %140 : vector<8x1xf32>
    %142 = math.rsqrt %141 : vector<8x1xf32>
    %143 = vector.broadcast %142 : vector<8x1xf32> to vector<8x64xf32>
    %144 = arith.mulf %134, %143 : vector<8x64xf32>
    %145 = vector.broadcast %127 : vector<1x64xf32> to vector<8x64xf32>
    %146 = arith.mulf %144, %145 : vector<8x64xf32>
    %147 = vector.broadcast %128 : vector<1x64xf32> to vector<8x64xf32>
    %148 = arith.addf %146, %147 : vector<8x64xf32>
    %c0_63 = arith.constant 0 : index
    %c0_64 = arith.constant 0 : index
    %149 = vector.load %arg14[%c0_63, %c0_64] : memref<8x64xf32, #tpu.memory_space<vmem>>, vector<8x64xf32>
    tpu.vector_store %arg14[%c0_63, %c0_64], %148 {strides = array<i32>} : memref<8x64xf32, #tpu.memory_space<vmem>>, vector<8x64xf32>,
    return
  }
  func.func @transform_0(%arg0: i32) -> (i32, i32) {
    %c0_i32 = arith.constant 0 : i32
    %c0_i32_0 = arith.constant 0 : i32
    return %arg0, %c0_i32 : i32, i32
  }
  func.func @transform_1(%arg0: i32) -> (i32, i32) {
    %c0_i32 = arith.constant 0 : i32
    %c0_i32_0 = arith.constant 0 : i32
    %c0_i32_1 = arith.constant 0 : i32
    return %c0_i32, %c0_i32_0 : i32, i32
  }
  func.func @transform_2(%arg0: i32) -> (i32, i32) {
    %c0_i32 = arith.constant 0 : i32
    %c0_i32_0 = arith.constant 0 : i32
    %c0_i32_1 = arith.constant 0 : i32
    return %c0_i32, %c0_i32_0 : i32, i32
  }
  func.func @transform_3(%arg0: i32) -> (i32, i32) {
    %c0_i32 = arith.constant 0 : i32
    %c0_i32_0 = arith.constant 0 : i32
    %c0_i32_1 = arith.constant 0 : i32
    return %c0_i32, %c0_i32_0 : i32, i32
  }
  func.func @transform_4(%arg0: i32) -> (i32, i32) {
    %c0_i32 = arith.constant 0 : i32
    %c0_i32_0 = arith.constant 0 : i32
    %c0_i32_1 = arith.constant 0 : i32
    return %c0_i32, %c0_i32_0 : i32, i32
  }
  func.func @transform_5(%arg0: i32) -> (i32, i32) {
    %c0_i32 = arith.constant 0 : i32
    %c0_i32_0 = arith.constant 0 : i32
    %c0_i32_1 = arith.constant 0 : i32
    return %c0_i32, %c0_i32_0 : i32, i32
  }
  func.func @transform_6(%arg0: i32) -> (i32, i32) {
    %c0_i32 = arith.constant 0 : i32
    %c0_i32_0 = arith.constant 0 : i32
    %c0_i32_1 = arith.constant 0 : i32
    return %c0_i32, %c0_i32_0 : i32, i32
  }
  func.func @transform_7(%arg0: i32) -> (i32, i32) {
    %c0_i32 = arith.constant 0 : i32
    %c0_i32_0 = arith.constant 0 : i32
    %c0_i32_1 = arith.constant 0 : i32
    return %c0_i32, %c0_i32_0 : i32, i32
  }
  func.func @transform_8(%arg0: i32) -> (i32, i32) {
    %c0_i32 = arith.constant 0 : i32
    %c0_i32_0 = arith.constant 0 : i32
    %c0_i32_1 = arith.constant 0 : i32
    return %c0_i32, %c0_i32_0 : i32, i32
  }
  func.func @transform_9(%arg0: i32) -> (i32, i32) {
    %c0_i32 = arith.constant 0 : i32
    %c0_i32_0 = arith.constant 0 : i32
    %c0_i32_1 = arith.constant 0 : i32
    return %c0_i32, %c0_i32_0 : i32, i32
  }
  func.func @transform_10(%arg0: i32) -> (i32, i32) {
    %c0_i32 = arith.constant 0 : i32
    %c0_i32_0 = arith.constant 0 : i32
    %c0_i32_1 = arith.constant 0 : i32
    return %c0_i32, %c0_i32_0 : i32, i32
  }
  func.func @transform_11(%arg0: i32) -> (i32, i32) {
    %c0_i32 = arith.constant 0 : i32
    %c0_i32_0 = arith.constant 0 : i32
    %c0_i32_1 = arith.constant 0 : i32
    return %c0_i32, %c0_i32_0 : i32, i32
  }
  func.func @transform_12(%arg0: i32) -> (i32, i32) {
    %c0_i32 = arith.constant 0 : i32
    %c0_i32_0 = arith.constant 0 : i32
    %c0_i32_1 = arith.constant 0 : i32
    return %c0_i32, %c0_i32_0 : i32, i32
  }
  func.func @transform_13(%arg0: i32) -> (i32, i32) {
    %c0_i32 = arith.constant 0 : i32
    %c0_i32_0 = arith.constant 0 : i32
    return %arg0, %c0_i32 : i32, i32
  }
}

</mosaic_0001>

<bundles_post_ra>
// kernel: _lambda_.5
= control target key start
LH: loop header
LB: loop body
LE: loop exit
PB: predicated region body
PF: predicated region fallthrough
CT: control target
= control target key end

     0   :  { %vm57_vm0 = vcmask 1024   ;;  %s141_s1 = inlined_call_operand.vmem [shape: f32[128,1], index: 1, kind: input, shape index: {}]   ;;  %s142_s2 = inlined_call_operand.<no memory space> [shape: f32[1,1], index: 2, kind: input, shape index: {}]   ;;  %s143_s0 = inlined_call_operand.vmem [shape: f32[2,128], index: 0, kind: input, shape index: {}]   ;;  %s144_s3 = inlined_call_operand.vmem [shape: f32[2,1], index: 3, kind: output, shape index: {}]  }
   0x1   :  { %v32_v0 = vld [vmem:[%s141_s1 + $0x78] sm:$0xff]  ;;  %v31_v1 = vld [vmem:[%s141_s1 + $0x70] sm:$0xff]  ;;  %v8_v2 = vstv %s142_s2  ;;  %v30_v3 = vld [vmem:[%s141_s1 + $0x68] sm:$0xff] }
   0x2   :  { %37 = vmatpush.msra.mxu0 %v32_v0  ;;  %9 = vst [vmem:[#allocation2] sm:$0x1] %v8_v2  ;;  %v29_v4 = vld [vmem:[%s141_s1 + $0x60] sm:$0xff]  ;;  %v28_v5 = vld [vmem:[%s141_s1 + $0x58] sm:$0xff]  ;;  %v27_v6 = vld [vmem:[%s141_s1 + $0x50] sm:$0xff] }
   0x3   :  { %v26_v7 = vld [vmem:[%s141_s1 + $0x48] sm:$0xff]  ;;  %v25_v8 = vld [vmem:[%s141_s1 + $0x40] sm:$0xff]  ;;  %v24_v9 = vld [vmem:[%s141_s1 + $0x38] sm:$0xff] }
   0x4   :  { %38 = vmatpush.msra.mxu0 %v31_v1  ;;  %v23_v10 = vld [vmem:[%s141_s1 + $0x30] sm:$0xff]  ;;  %v22_v11 = vld [vmem:[%s141_s1 + $0x28] sm:$0xff]  ;;  %v21_v12 = vld [vmem:[%s141_s1 + $0x20] sm:$0xff] }
   0x5   :  { %v20_v13 = vld [vmem:[%s141_s1 + $0x18] sm:$0xff]  ;;  %v19_v14 = vld [vmem:[%s141_s1 + $0x10] sm:$0xff]  ;;  %v18_v15 = vld [vmem:[%s141_s1 + $0x8] sm:$0xff] }
   0x6   :  { %39 = vmatpush.msra.mxu0 %v30_v3  ;;  %v17_v16 = vld [vmem:[%s141_s1] sm:$0xff] }
   0x7   :  { %v16_v17 = vld [vmem:[%s143_s0] sm:$0x3] }
   0x8   :  { %40 = vmatpush.msra.mxu0 %v29_v4 }
   0x9   :  { %v63_v18 = vld [vmem:[#allocation2] ss:$0 sm:$0xff] }
   0xa   :  { %41 = vmatpush.msra.mxu0 %v28_v5 }
   0xc   :  { %42 = vmatpush.msra.mxu0 %v27_v6 }
   0xe   :  { %43 = vmatpush.msra.mxu0 %v26_v7 }
  0x10   :  { %44 = vmatpush.msra.mxu0 %v25_v8 }
  0x12   :  { %45 = vmatpush.msra.mxu0 %v24_v9 }
  0x14   :  { %46 = vmatpush.msra.mxu0 %v23_v10 }
  0x16   :  { %47 = vmatpush.msra.mxu0 %v22_v11 }
  0x18   :  { %48 = vmatpush.msra.mxu0 %v21_v12 }
  0x1a   :  { %49 = vmatpush.msra.mxu0 %v20_v13 }
  0x1c   :  { %50 = vmatpush.msra.mxu0 %v19_v14 }
  0x1e   :  { %51 = vmatpush.msra.mxu0 %v18_v15 }
  0x20   :  { %52 = vmatpush.msra.mxu0 %v17_v16 }
  0x21   :  { %53 = vmatmul.f32.vlgmr.msra.gmra.mxu0 %v16_v17 }
  0x9e   :  { %v54_v19 = vpop.f32.mrf.mxu0 }
  0x9f   :  { %v55_v20 = vadd.f32 %v63_v18, %v54_v19 }
  0xa1   :  { %58 = vst.msk [vmem:[%s144_s3] sm:$0x3] %vm57_vm0, %v55_v20 }

// kernel: _lambda_.3
= control target key start
LH: loop header
LB: loop body
LE: loop exit
PB: predicated region body
PF: predicated region fallthrough
CT: control target
= control target key end

     0   :  { %s1235_s25 = smov 0   ;;  %s1492_s0 = inlined_call_operand.vmem [shape: f32[16,64], index: 0, kind: input, shape index: {}]   ;;  %s1493_s1 = inlined_call_operand.vmem [shape: f32[64,192], index: 1, kind: input, shape index: {}]   ;;  %s1494_s2 = inlined_call_operand.vmem [shape: f32[1,192], index: 2, kind: input, shape index: {}]   ;;  %s1495_s3 = inlined_call_operand.vmem [shape: f32[64,64], index: 3, kind: input, shape index: {}]   ;;  %s1496_s4 = inlined_call_operand.vmem [shape: f32[1,64], index: 4, kind: input, shape index: {}]   ;;  %s1497_s5 = inlined_call_operand.vmem [shape: f32[1,64], index: 5, kind: input, shape index: {}]   ;;  %s1498_s6 = inlined_call_operand.vmem [shape: f32[1,64], index: 6, kind: input, shape index: {}]   ;;  %s1499_s7 = inlined_call_operand.vmem [shape: f32[64,128], index: 7, kind: input, shape index: {}]   ;;  %s1500_s8 = inlined_call_operand.vmem [shape: f32[1,128], index: 8, kind: input, shape index: {}]   ;;  %s1501_s9 = inlined_call_operand.vmem [shape: f32[128,64], index: 9, kind: input, shape index: {}]   ;;  %s1502_s10 = inlined_call_operand.vmem [shape: f32[1,64], index: 10, kind: input, shape index: {}]   ;;  %s1503_s11 = inlined_call_operand.vmem [shape: f32[1,64], index: 11, kind: input, shape index: {}]   ;;  %s1504_s12 = inlined_call_operand.vmem [shape: f32[1,64], index: 12, kind: input, shape index: {}]   ;;  %s1505_s13 = inlined_call_operand.vmem [shape: f32[16,64], index: 13, kind: output, shape index: {}]  }
   0x1 LB: > { %s1076_s26 = sadd.s32 4294967295, %s1155_s25   ;;  %p1080_p0 = scmp.ge.s32.totalorder %s1155_s25, 1  ;;  %s1155_s25 = sphi %s1235_s25, %s23_s25  }
   0x2   : > { %p386_p1 = scmp.lt.s32.totalorder %s1155_s25, 3 }
   0x4   : > { %p387_p2 = pnand %p1080_p0, %p386_p1 }
   0x5   : > { %p428_p3 = scmp.lt.s32.totalorder (!%p387_p2), %s1076_s26, 1  ;;  %s1157_s17 = smov (!%p387_p2), 112  }
   0x6   : > { %390 = sbr.rel (%p387_p2) target bundleno = 2542 (0x9ee), region = 72  ;;  %s1158_s18 = smov (!%p387_p2), 64  }
   0x7   : > { %s1159_s30 = smov (!%p387_p2), 32   ;;  %s1160_s14 = smov (!%p387_p2), 16  }
   0x8   : > { %s1161_s27 = smov (!%p387_p2), 48   ;;  %s1162_s15 = smov (!%p387_p2), 96  }
   0xb   : > { %v451_v0 = vld [vmem:[%s1493_s1 + $0x70] sm:$0xff]  ;;  %v449_v1 = vld [vmem:[%s1493_s1 + $0x60] sm:$0xff]  ;;  %s1507_s26 = smov (!%p428_p3, %s1076_s26), 1  ;;  %vm459_vm0 = vcmask 523264   ;;  %vm514_vm1 = vcmask 130048   ;;  %vm540_vm2 = vcmask 64512  }
   0xc   : > { %471 = vmatpush.msra.mxu0 %v451_v0  ;;  %v447_v2 = vld [vmem:[%s1493_s1 + $0x50] sm:$0xff]  ;;  %v445_v3 = vld [vmem:[%s1493_s1 + $0x40] sm:$0xff]  ;;  %s1081_s20 = sshll.u32 %s1507_s26, 3  ;;  %v452_v15 = vld [vmem:[%s1493_s1 + $0x78] sm:$0xff] }
   0xd   : > { %v443_v4 = vld [vmem:[%s1493_s1 + $0x30] sm:$0xff]  ;;  %v441_v5 = vld [vmem:[%s1493_s1 + $0x20] sm:$0xff]  ;;  %s431_s29 = scalar_lea.vmem %s1492_s0, %s1081_s20  ;;  %v450_v16 = vld [vmem:[%s1493_s1 + $0x68] sm:$0xff]  ;;  %491 = vmatpush.msra.mxu1 %v452_v15  ;;  %s435_s24 = scalar_lea.vmem %s1505_s13, %s1081_s20 }
   0xe   : > { %472 = vmatpush.msra.mxu0 %v449_v1  ;;  %v439_v6 = vld [vmem:[%s1493_s1 + $0x10] sm:$0xff]  ;;  %v437_v7 = vld [vmem:[%s1493_s1] sm:$0xff]  ;;  %v448_v18 = vld [vmem:[%s1493_s1 + $0x58] sm:$0xff] }
   0xf   : > { %v1275_v8 = vld [vmem:[%s431_s29] sm:$0xff]  ;;  %492 = vmatpush.msra.mxu1 %v450_v16  ;;  %v446_v20 = vld [vmem:[%s1493_s1 + $0x48] sm:$0xff]  ;;  %v444_v21 = vld [vmem:[%s1493_s1 + $0x38] sm:$0xff] }
  0x10   : > { %473 = vmatpush.msra.mxu0 %v447_v2  ;;  %v453_v9 = vld [vmem:[%s1494_s2] sm:$0x3]  ;;  %v442_v22 = vld [vmem:[%s1493_s1 + $0x28] sm:$0xff]  ;;  %v440_v23 = vld [vmem:[%s1493_s1 + $0x18] sm:$0xff] }
  0x11   : > { %v455_v10 = vperm.slane %v453_v9, 0  ;;  %493 = vmatpush.msra.mxu1 %v448_v18  ;;  %v438_v24 = vld [vmem:[%s1493_s1 + $0x8] sm:$0xff]  ;;  %v456_v31 = vperm.slane %v453_v9, 1  ;;  %v503_v40 = vld [vmem:[%s1495_s3] sm:$0xff]  ;;  %v506_v60 = vld [vmem:[%s1495_s3 + $0x18] sm:$0xff] }
  0x12   : > { %474 = vmatpush.msra.mxu0 %v445_v3  ;;  %v504_v34 = vld [vmem:[%s1495_s3 + $0x8] sm:$0xff]  ;;  %v505_v61 = vld [vmem:[%s1495_s3 + $0x10] sm:$0xff]  ;;  %v507_v18 = vld [vmem:[%s1495_s3 + $0x20] sm:$0xff] }
  0x13   : > { %494 = vmatpush.msra.mxu1 %v446_v20 }
  0x14   : > { %475 = vmatpush.msra.mxu0 %v443_v4 }
  0x15   : > { %495 = vmatpush.msra.mxu1 %v444_v21 }
  0x16   : > { %476 = vmatpush.msra.mxu0 %v441_v5 }
  0x17   : > { %496 = vmatpush.msra.mxu1 %v442_v22 }
  0x18   : > { %477 = vmatpush.msra.mxu0 %v439_v6 }
  0x19   : > { %497 = vmatpush.msra.mxu1 %v440_v23 }
  0x1a   : > { %478 = vmatpush.msra.mxu0 %v437_v7 }
  0x1b   : > { %1083 = vmatmul.msk.f32.vlgmr.msra.gmra.mxu0 %vm459_vm0, %v1275_v8  ;;  %498 = vmatpush.msra.mxu1 %v438_v24 }
  0x1c   : > { %1084 = vmatmul.msk.f32.vlgmr.msra.gmra.mxu1 %vm459_vm0, %v1275_v8 }
  0x1d   : > { %682 = vmatpush.msrb.mxu1 %v504_v34 }
  0x1f   : > { %683 = vmatpush.msrb.mxu1 %v503_v40 }
  0x98   : > { %v480_v11 = vpop.f32.mrf.mxu0 }
  0x99   : > { %v1282_v12 = vadd.f32 %v480_v11, %v455_v10  ;;  %v500_v32 = vpop.f32.mrf.mxu1 }
  0x9a   : > { %v1322_v33 = vadd.f32 %v500_v32, %v456_v31  ;;  %v1120_v32 = vld [vmem:[%s1496_s4] ss:$0 sm:$0xff] }
  0x9b   : > { %575 = vrot.lane.b32.xlu2 %v1282_v12, %s1157_s17  ;;  %512 = vrot.lane.b32.xlu0 %v1282_v12, %s1158_s18 }
  0x9c   : > { %570 = vmatpush.msra.mxu3 %v1322_v33 }
  0xf5   : > { %v576_v39 = vpop.permute.xlu2 %575 }
 0x10d   : > { %v513_v13 = vpop.permute.xlu0 %512 }
 0x10e   : > { %1085 = vmatpush.xpose.msk.msrb.mxu0 %vm514_vm1, %v513_v13 }
 0x111   : > { %1086 = vmatmul.msk.f32.vlgmr.msrb.gmra.mxu0 %vm514_vm1, %v1282_v12 }
 0x18e   : > { %v536_v14 = vpop.f32.mrf.mxu0 }
 0x18f   : > { %v539_v17 = vmul.f32 0.25, %v536_v14 }
 0x191   : > { %v541_v19 = vsel %vm540_vm2, %v539_v17, -inf }
 0x192   : > { %542 = vmax.xlane.f32.xlu0 %v541_v19 }
 0x1a6   : > { %690 = vrot.lane.b32.xlu0 %v1282_v12, %s1159_s30 }
 0x1ae   : > { %780 = vrot.lane.b32.xlu0 %v1282_v12, %s1160_s14 }
 0x205   : > { %v543_v25 = vpop.xlane.xlu0 %542 }
 0x206   : > { %v544_v26 = vsub.f32 %v539_v17, %v543_v25  ;;  %v508_v17 = vld [vmem:[%s1495_s3 + $0x28] sm:$0xff]  ;;  %v510_v25 = vld [vmem:[%s1495_s3 + $0x38] sm:$0xff] }
 0x208   : > { %v545_v27 = vmul.f32 1.442695, %v544_v26  ;;  %v509_v26 = vld [vmem:[%s1495_s3 + $0x30] sm:$0xff] }
 0x20a   : > { %1127 = vpow2.f32 %v545_v27 }
 0x210   : > { %v1128_v28 = vpop.eup %1127 }
 0x211   : > { %v547_v29 = vsel %vm540_vm2, %v1128_v28, 0.0 }
 0x212   : > { %548 = vadd.xlane.f32.xlu1 %v547_v29 }
 0x218   : > { %v691_v30 = vpop.permute.xlu0 %690 }
 0x219   : > { %1093 = vmatpush.xpose.msk.msra.mxu0 %vm514_vm1, %v691_v30 }
 0x220   : > { %v781_v49 = vpop.permute.xlu0 %780 }
 0x22b   : > { %577 = vrot.lane.b32.xlu1 %v1282_v12, %s1161_s27 }
 0x285   : > { %v549_v35 = vpop.xlane.xlu1 %548 }
 0x286   : > { %1129 = vrcp.f32 %v549_v35 }
 0x28c   : > { %v1130_v36 = vpop.eup %1129 }
 0x28d   : > { %v551_v37 = vmul.f32 %v1130_v36, %v1128_v28 }
 0x28f   : > { %1087 = vmatmul.msk.f32.vlgmr.msra.gmra.mxu3 %vm540_vm2, %v551_v37 }
 0x29d   : > { %v578_v38 = vpop.permute.xlu1 %577 }
 0x29e   : > { %1088 = vmatpush.xpose.msk.msrb.mxu3 %vm514_vm1, %v578_v38  ;;  %v1164_v38 = vmov 64.0  }
 0x2a1   : > { %1089 = vmatmul.msk.f32.vlgmr.msrb.gmra.mxu3 %vm514_vm1, %v576_v39 }
 0x2a2   : > { %659 = vmatpush.msra.mxu3 %v506_v60 }
 0x2a4   : > { %660 = vmatpush.msra.mxu3 %v505_v61 }
 0x2a6   : > { %771 = vmatpush.msrb.mxu3 %v508_v17 }
 0x2a8   : > { %772 = vmatpush.msrb.mxu3 %v507_v18 }
 0x312   : > { %v572_v41 = vpop.f32.mrf.mxu3 }
 0x313   : > { %1092 = vmatmul.msk.f32.vlgmr.msrb.gmra.mxu1 %vm514_vm1, %v572_v41 }
 0x324   : > { %v600_v42 = vpop.f32.mrf.mxu3 }
 0x325   : > { %v603_v43 = vmul.f32 0.25, %v600_v42 }
 0x327   : > { %v604_v44 = vsel %vm540_vm2, %v603_v43, -inf }
 0x328   : > { %605 = vmax.xlane.f32.xlu2 %v604_v44 }
 0x340   : > { %616 = vrot.lane.b32.xlu2 %v1322_v33, %s1157_s17  ;;  %s1163_s17 = smov 80  }
 0x348   : > { %688 = vrot.lane.b32.xlu2 %v1282_v12, %s1162_s15 }
 0x390   : > { %v685_v19 = vpop.f32.mrf.mxu1 }
 0x39b   : > { %v606_v45 = vpop.xlane.xlu2 %605 }
 0x39c   : > { %v607_v46 = vsub.f32 %v603_v43, %v606_v45 }
 0x39e   : > { %v608_v47 = vmul.f32 1.442695, %v607_v46 }
 0x3a0   : > { %1131 = vpow2.f32 %v608_v47 }
 0x3a3   : > { %v617_v48 = vpop.permute.xlu2 %616 }
 0x3a4   : > { %637 = vmatpush.msra.mxu2 %v617_v48 }
 0x3a6   : > { %1097 = vmatpush.xpose.msk.msrb.mxu2 %vm514_vm1, %v781_v49  ;;  %v1132_v50 = vpop.eup %1131  ;;  %v920_v49 = vld [vmem:[%s1499_s7 + $0x38] sm:$0xff] }
 0x3a7   : > { %v610_v51 = vsel %vm540_vm2, %v1132_v50, 0.0 }
 0x3a8   : > { %611 = vadd.xlane.f32.xlu1 %v610_v51  ;;  %v918_v51 = vld [vmem:[%s1499_s7 + $0x28] sm:$0xff] }
 0x3ab   : > { %v689_v52 = vpop.permute.xlu2 %688 }
 0x3ac   : > { %1094 = vmatmul.msk.f32.vlgmr.msra.gmra.mxu0 %vm514_vm1, %v689_v52  ;;  %v917_v52 = vld [vmem:[%s1499_s7 + $0x20] sm:$0xff] }
 0x3c1   : > { %778 = vrot.lane.b32.xlu1 %v1282_v12, %s1163_s17 }
 0x41b   : > { %v612_v53 = vpop.xlane.xlu1 %611 }
 0x41c   : > { %1133 = vrcp.f32 %v612_v53  ;;  %v916_v53 = vld [vmem:[%s1499_s7 + $0x18] sm:$0xff] }
 0x422   : > { %v1134_v54 = vpop.eup %1133 }
 0x423   : > { %v614_v55 = vmul.f32 %v1134_v54, %v1132_v50  ;;  %v919_v50 = vld [vmem:[%s1499_s7 + $0x30] sm:$0xff] }
 0x424   : > { %v915_v54 = vld [vmem:[%s1499_s7 + $0x10] sm:$0xff] }
 0x425   : > { %1090 = vmatmul.msk.f32.vlgmr.msra.gmra.mxu2 %vm540_vm2, %v614_v55  ;;  %v914_v55 = vld [vmem:[%s1499_s7 + $0x8] sm:$0xff] }
 0x429   : > { %v713_v56 = vpop.f32.mrf.mxu0 }
 0x42a   : > { %v716_v57 = vmul.f32 0.25, %v713_v56  ;;  %v913_v56 = vld [vmem:[%s1499_s7] sm:$0xff] }
 0x42c   : > { %v717_v58 = vsel %vm540_vm2, %v716_v57, -inf }
 0x42d   : > { %718 = vmax.xlane.f32.xlu0 %v717_v58  ;;  %v963_v58 = vld [vmem:[%s1501_s9 + $0x70] sm:$0xff] }
 0x433   : > { %v779_v59 = vpop.permute.xlu1 %778 }
 0x434   : > { %1098 = vmatmul.msk.f32.vlgmr.msrb.gmra.mxu2 %vm514_vm1, %v779_v59  ;;  %v962_v59 = vld [vmem:[%s1501_s9 + $0x68] sm:$0xff] }
 0x4a0   : > { %v719_v62 = vpop.xlane.xlu0 %718 }
 0x4a1   : > { %v720_v63 = vsub.f32 %v716_v57, %v719_v62  ;;  %v964_v57 = vld [vmem:[%s1501_s9 + $0x78] sm:$0xff]  ;;  %v961_v62 = vld [vmem:[%s1501_s9 + $0x60] sm:$0xff] }
 0x4a2   : > { %969 = vmatpush.msra.mxu2 %v964_v57 }
 0x4a3   : > { %v721_v0 = vmul.f32 1.442695, %v720_v63 }
 0x4a4   : > { %970 = vmatpush.msra.mxu2 %v963_v58 }
 0x4a5   : > { %1135 = vpow2.f32 %v721_v0  ;;  %v960_v0 = vld [vmem:[%s1501_s9 + $0x58] sm:$0xff] }
 0x4a6   : > { %971 = vmatpush.msra.mxu2 %v962_v59 }
 0x4a8   : > { %v639_v1 = vpop.f32.mrf.mxu2  ;;  %972 = vmatpush.msra.mxu2 %v961_v62 }
 0x4a9   : > { %1091 = vmatmul.msk.f32.vlgmr.msra.gmra.mxu3 %vm514_vm1, %v639_v1  ;;  %v959_v1 = vld [vmem:[%s1501_s9 + $0x50] sm:$0xff] }
 0x4aa   : > { %936 = vmatpush.msra.mxu3 %v920_v49  ;;  %973 = vmatpush.msra.mxu2 %v960_v0 }
 0x4ab   : > { %v1136_v2 = vpop.eup %1135 }
 0x4ac   : > { %v723_v3 = vsel %vm540_vm2, %v1136_v2, 0.0  ;;  %937 = vmatpush.msra.mxu3 %v919_v50  ;;  %974 = vmatpush.msra.mxu2 %v959_v1 }
 0x4ad   : > { %724 = vadd.xlane.f32.xlu1 %v723_v3  ;;  %v957_v3 = vld [vmem:[%s1501_s9 + $0x40] sm:$0xff] }
 0x4ae   : > { %938 = vmatpush.msra.mxu3 %v918_v51 }
 0x4b0   : > { %939 = vmatpush.msra.mxu3 %v917_v52 }
 0x4b2   : > { %940 = vmatpush.msra.mxu3 %v916_v53 }
 0x4b4   : > { %941 = vmatpush.msra.mxu3 %v915_v54 }
 0x4b6   : > { %942 = vmatpush.msra.mxu3 %v914_v55 }
 0x4b7   : > { %v803_v4 = vpop.f32.mrf.mxu2 }
 0x4b8   : > { %v806_v5 = vmul.f32 0.25, %v803_v4  ;;  %943 = vmatpush.msra.mxu3 %v913_v56 }
 0x4ba   : > { %v807_v6 = vsel %vm540_vm2, %v806_v5, -inf }
 0x4bb   : > { %808 = vmax.xlane.f32.xlu2 %v807_v6 }
 0x4d3   : > { %728 = vrot.lane.b32.xlu2 %v1322_v33, %s1162_s15 }
 0x520   : > { %v725_v7 = vpop.xlane.xlu1 %724 }
 0x521   : > { %1137 = vrcp.f32 %v725_v7  ;;  %v955_v7 = vld [vmem:[%s1501_s9 + $0x30] sm:$0xff] }
 0x527   : > { %v1138_v12 = vpop.eup %1137 }
 0x528   : > { %v727_v13 = vmul.f32 %v1138_v12, %v1136_v2  ;;  %v958_v2 = vld [vmem:[%s1501_s9 + $0x48] sm:$0xff]  ;;  %v953_v12 = vld [vmem:[%s1501_s9 + $0x20] sm:$0xff] }
 0x529   : > { %975 = vmatpush.msra.mxu2 %v958_v2 }
 0x52b   : > { %976 = vmatpush.msra.mxu2 %v957_v3 }
 0x52c   : > { %v662_v28 = vpop.f32.mrf.mxu3 }
 0x52d   : > { %v686_v30 = vadd.f32 %v685_v19, %v662_v28  ;;  %v1122_v19 = vld [vmem:[%s1498_s6] ss:$0 sm:$0xff] }
 0x52e   : > { %v809_v9 = vpop.xlane.xlu2 %808 }
 0x52f   : > { %v810_v10 = vsub.f32 %v806_v5, %v809_v9  ;;  %v956_v5 = vld [vmem:[%s1501_s9 + $0x38] sm:$0xff] }
 0x530   : > { %977 = vmatpush.msra.mxu2 %v956_v5 }
 0x531   : > { %v811_v11 = vmul.f32 1.442695, %v810_v10  ;;  %v954_v10 = vld [vmem:[%s1501_s9 + $0x28] sm:$0xff] }
 0x532   : > { %978 = vmatpush.msra.mxu2 %v955_v7 }
 0x533   : > { %1139 = vpow2.f32 %v811_v11 }
 0x534   : > { %979 = vmatpush.msra.mxu2 %v954_v10 }
 0x536   : > { %v729_v14 = vpop.permute.xlu2 %728  ;;  %980 = vmatpush.msra.mxu2 %v953_v12 }
 0x537   : > { %749 = vmatpush.msra.mxu1 %v729_v14  ;;  %v952_v14 = vld [vmem:[%s1501_s9 + $0x18] sm:$0xff] }
 0x538   : > { %1095 = vmatmul.msk.f32.vlgmr.msra.gmra.mxu1 %vm540_vm2, %v727_v13  ;;  %981 = vmatpush.msra.mxu2 %v952_v14 }
 0x539   : > { %v1140_v15 = vpop.eup %1139  ;;  %861 = vmatpush.msrb.mxu1 %v510_v25  ;;  %v1123_v25 = vld [vmem:[%s1500_s8] ss:$0 sm:$0xff] }
 0x53a   : > { %v813_v16 = vsel %vm540_vm2, %v1140_v15, 0.0 }
 0x53b   : > { %814 = vadd.xlane.f32.xlu0 %v813_v16  ;;  %862 = vmatpush.msrb.mxu1 %v509_v26  ;;  %v1121_v16 = vld [vmem:[%s1497_s5] ss:$0 sm:$0xff] }
 0x54f   : > { %818 = vrot.lane.b32.xlu0 %v1322_v33, %s1163_s17 }
 0x5ae   : > { %v815_v20 = vpop.xlane.xlu0 %814 }
 0x5af   : > { %1141 = vrcp.f32 %v815_v20 }
 0x5b0   : > { %1143 = vrcp.f32 %v1164_v38 }
 0x5b5   : > { %v751_v21 = vpop.f32.mrf.mxu1  ;;  %v1142_v22 = vpop.eup %1141 }
 0x5b6   : > { %1096 = vmatmul.msk.f32.vlgmr.msrb.gmra.mxu3 %vm514_vm1, %v751_v21  ;;  %v817_v23 = vmul.f32 %v1142_v22, %v1140_v15  ;;  %v1144_v39 = vpop.eup %1143  ;;  %v951_v22 = vld [vmem:[%s1501_s9 + $0x10] sm:$0xff] }
 0x5b7   : > { %v880_v40 = vmul.f32 64.0, %v1144_v39  ;;  %vm884_vm3 = vweird.f32 %v1144_v39  ;;  %982 = vmatpush.msra.mxu2 %v951_v22 }
 0x5b9   : > { %v881_v41 = vsub.f32 1.0, %v880_v40 }
 0x5bb   : > { %v882_v42 = vmul.f32 %v1144_v39, %v881_v41 }
 0x5bd   : > { %v883_v43 = vadd.f32 %v1144_v39, %v882_v42 }
 0x5bf   : > { %v1383_v44 = vsel %vm884_vm3, %v1144_v39, %v883_v43 }
 0x5c1   : > { %v819_v24 = vpop.permute.xlu0 %818 }
 0x5c2   : > { %839 = vmatpush.msrb.mxu0 %v819_v24  ;;  %v949_v24 = vld [vmem:[%s1501_s9] sm:$0xff] }
 0x5c3   : > { %1099 = vmatmul.msk.f32.vlgmr.msrb.gmra.mxu0 %vm540_vm2, %v817_v23  ;;  %v950_v23 = vld [vmem:[%s1501_s9 + $0x8] sm:$0xff] }
 0x5c4   : > { %983 = vmatpush.msra.mxu2 %v950_v23 }
 0x5c6   : > { %984 = vmatpush.msra.mxu2 %v949_v24 }
 0x639   : > { %v774_v29 = vpop.f32.mrf.mxu3 }
 0x63a   : > { %v777_v31 = vadd.f32 %v774_v29, %v686_v30  ;;  %v1124_v29 = vld [vmem:[%s1502_s10] ss:$0 sm:$0xff] }
 0x640   : > { %v841_v27 = vpop.f32.mrf.mxu0 }
 0x641   : > { %1100 = vmatmul.msk.f32.vlgmr.msrb.gmra.mxu1 %vm514_vm1, %v841_v27 }
 0x6be   : > { %v864_v33 = vpop.f32.mrf.mxu1 }
 0x6bf   : > { %v867_v34 = vadd.f32 %v864_v33, %v777_v31 }
 0x6c1   : > { %v872_v35 = vadd.f32 %v1120_v32, %v867_v34 }
 0x6c3   : > { %v873_v36 = vadd.f32 %v872_v35, %v1275_v8 }
 0x6c5   : > { %v876_v37 = vsel %vm459_vm0, %v873_v36, 0.0 }
 0x6c6   : > { %877 = vadd.xlane.f32.xlu1 %v876_v37 }
 0x739   : > { %v878_v45 = vpop.xlane.xlu1 %877 }
 0x73a   : > { %v886_v46 = vmul.f32 %v1383_v44, %v878_v45 }
 0x73c   : > { %v887_v47 = vsub.f32 %v873_v36, %v886_v46 }
 0x73e   : > { %v888_v48 = vmul.f32 %v887_v47, %v887_v47 }
 0x740   : > { %v889_v8 = vsel %vm459_vm0, %v888_v48, 0.0 }
 0x741   : > { %890 = vadd.xlane.f32.xlu2 %v889_v8  ;;  %v1125_v8 = vld [vmem:[%s1503_s11] ss:$0 sm:$0xff] }
 0x7b4   : > { %v891_v60 = vpop.xlane.xlu2 %890 }
 0x7b5   : > { %v892_v61 = vmul.f32 %v891_v60, %v1383_v44 }
 0x7b7   : > { %v893_v63 = vadd.f32 1e-05, %v892_v61 }
 0x7b9   : > { %1145 = vrsqrt.f32 %v893_v63  ;;  %vm900_vm5 = vweird.f32 %v893_v63 }
 0x7bf   : > { %v1146_v4 = vpop.eup %1145 }
 0x7c0   : > { %v895_v6 = vmul.f32 %v1146_v4, %v893_v63  ;;  %vm901_vm4 = vweird.f32 %v1146_v4 }
 0x7c1   : > { %vm902_vm6 = vmor %vm900_vm5, %vm901_vm4 }
 0x7c2   : > { %v896_v9 = vmul.f32 %v1146_v4, %v895_v6 }
 0x7c4   : > { %v897_v11 = vmul.f32 0.5, %v896_v9 }
 0x7c6   : > { %v898_v13 = vsub.f32 1.5, %v897_v11 }
 0x7c8   : > { %v899_v15 = vmul.f32 %v1146_v4, %v898_v13 }
 0x7ca   : > { %v903_v17 = vsel %vm902_vm6, %v1146_v4, %v899_v15 }
 0x7cb   : > { %v904_v18 = vmul.f32 %v903_v17, %v887_v47 }
 0x7cd   : > { %v908_v20 = vmul.f32 %v1121_v16, %v904_v18 }
 0x7cf   : > { %v912_v21 = vadd.f32 %v1122_v19, %v908_v20 }
 0x7d1   : > { %1101 = vmatmul.msk.f32.vlgmr.msra.gmra.mxu3 %vm459_vm0, %v912_v21 }
 0x854   : > { %v945_v26 = vpop.f32.mrf.mxu3 }
 0x855   : > { %v946_v27 = vadd.f32 %v1123_v25, %v945_v26 }
 0x857   : > { %v948_v28 = vmax.f32 %v946_v27, 0.0 }
 0x859   : > { %985 = vmatmul.f32.vlgmr.msra.gmra.mxu2 %v948_v28 }
 0x8dc   : > { %v986_v30 = vpop.f32.mrf.mxu2 }
 0x8dd   : > { %v987_v31 = vadd.f32 %v1124_v29, %v986_v30 }
 0x8df   : > { %v989_v32 = vadd.f32 %v987_v31, %v912_v21 }
 0x8e1   : > { %v992_v33 = vsel %vm459_vm0, %v989_v32, 0.0 }
 0x8e2   : > { %993 = vadd.xlane.f32.xlu0 %v992_v33 }
 0x955   : > { %v994_v34 = vpop.xlane.xlu0 %993 }
 0x956   : > { %v995_v35 = vmul.f32 %v994_v34, %v1383_v44 }
 0x958   : > { %v996_v36 = vsub.f32 %v989_v32, %v995_v35 }
 0x95a   : > { %v997_v37 = vmul.f32 %v996_v36, %v996_v36 }
 0x95c   : > { %v998_v38 = vsel %vm459_vm0, %v997_v37, 0.0 }
 0x95d   : > { %999 = vadd.xlane.f32.xlu1 %v998_v38 }
 0x9d0   : > { %v1000_v39 = vpop.xlane.xlu1 %999 }
 0x9d1   : > { %v1001_v40 = vmul.f32 %v1000_v39, %v1383_v44  ;;  %v1126_v44 = vld [vmem:[%s1504_s12] ss:$0 sm:$0xff] }
 0x9d3   : > { %v1002_v41 = vadd.f32 1e-05, %v1001_v40 }
 0x9d5   : > { %1147 = vrsqrt.f32 %v1002_v41  ;;  %vm1009_vm8 = vweird.f32 %v1002_v41 }
 0x9db   : > { %v1148_v42 = vpop.eup %1147 }
 0x9dc   : > { %v1004_v43 = vmul.f32 %v1148_v42, %v1002_v41  ;;  %vm1010_vm7 = vweird.f32 %v1148_v42 }
 0x9dd   : > { %vm1011_vm9 = vmor %vm1009_vm8, %vm1010_vm7 }
 0x9de   : > { %v1005_v45 = vmul.f32 %v1148_v42, %v1004_v43 }
 0x9e0   : > { %v1006_v46 = vmul.f32 0.5, %v1005_v45 }
 0x9e2   : > { %v1007_v47 = vsub.f32 1.5, %v1006_v46 }
 0x9e4   : > { %v1008_v48 = vmul.f32 %v1148_v42, %v1007_v47 }
 0x9e6   : > { %v1012_v49 = vsel %vm1011_vm9, %v1148_v42, %v1008_v48 }
 0x9e7   : > { %v1013_v50 = vmul.f32 %v1012_v49, %v996_v36 }
 0x9e9   : > { %v1017_v51 = vmul.f32 %v1125_v8, %v1013_v50 }
 0x9eb   : > { %v1021_v52 = vadd.f32 %v1126_v44, %v1017_v51 }
 0x9ed   : > { %1022 = vst.msk [vmem:[%s435_s24] sm:$0xff] %vm459_vm0, %v1021_v52 }
 0x9ee PF: > { %s23_s25 = sadd.s32 1, %s1155_s25  }
 0x9ef   : > { %p20_p4 = scmp.ge.s32.totalorder %s23_s25, 4  }
 0x9f1   :  { %22 = sbr.rel (!%p20_p4) target bundleno = 1 (0x1), region = 102 }

// kernel: _lambda_.4
= control target key start
LH: loop header
LB: loop body
LE: loop exit
PB: predicated region body
PF: predicated region fallthrough
CT: control target
= control target key end

     0   :  { %18 = vsyncpa [#allocation3], 0  ;;  %s1310_s25 = smov 0   ;;  %s1567_s0 = inlined_call_operand.vmem [shape: f32[16,64], index: 0, kind: input, shape index: {}]   ;;  %s1568_s1 = inlined_call_operand.vmem [shape: f32[64,192], index: 1, kind: input, shape index: {}]   ;;  %s1569_s2 = inlined_call_operand.vmem [shape: f32[1,192], index: 2, kind: input, shape index: {}]   ;;  %s1570_s3 = inlined_call_operand.vmem [shape: f32[64,64], index: 3, kind: input, shape index: {}]   ;;  %s1571_s4 = inlined_call_operand.vmem [shape: f32[1,64], index: 4, kind: input, shape index: {}]   ;;  %s1572_s5 = inlined_call_operand.vmem [shape: f32[1,64], index: 5, kind: input, shape index: {}]   ;;  %s1573_s6 = inlined_call_operand.vmem [shape: f32[1,64], index: 6, kind: input, shape index: {}]   ;;  %s1574_s7 = inlined_call_operand.vmem [shape: f32[64,128], index: 7, kind: input, shape index: {}]   ;;  %s1575_s8 = inlined_call_operand.vmem [shape: f32[1,128], index: 8, kind: input, shape index: {}]   ;;  %s1576_s9 = inlined_call_operand.vmem [shape: f32[128,64], index: 9, kind: input, shape index: {}]   ;;  %s1577_s10 = inlined_call_operand.vmem [shape: f32[1,64], index: 10, kind: input, shape index: {}]   ;;  %s1578_s11 = inlined_call_operand.vmem [shape: f32[1,64], index: 11, kind: input, shape index: {}]   ;;  %s1579_s12 = inlined_call_operand.hbm [shape: f32[1,64], index: 12, kind: input, shape index: {}]   ;;  %s1580_s13 = inlined_call_operand.vmem [shape: f32[16,64], index: 13, kind: output, shape index: {}]  }
   0x1 LB: > { %s1103_s26 = sadd.s32 4294967295, %s1229_s25   ;;  %p1105_p0 = scmp.ge.s32.totalorder %s1229_s25, 1  ;;  %s1229_s25 = sphi %s1310_s25, %s24_s25  }
   0x2   : > { %p333_p1 = scmp.lt.s32.totalorder %s1229_s25, 3  ;;  %s378_s29 = sshll.u32 %s1579_s12, 4  ;;  %s379_s29 = int_to_ptr.hbm [resolvable:$true] %s378_s29 }
   0x3   : > { %p1141_p3 = scmp.eq.s32.totalorder %s1103_s26, 0  ;;  %s1231_s30 = smov [#allocation2]  }
   0x4   : > { %p334_p2 = pnand %p1105_p0, %p333_p1  ;;  %s380_s14 = sshll.u32 %s1231_s30, 4  ;;  %s381_s14 = int_to_ptr.vmem [resolvable:$true] %s380_s14 }
   0x6   : > { %p1137_p4 = pneg %p334_p2  ;;  %400 = sbr.rel (%p334_p2) target bundleno = 2543 (0x9ef), region = 72 }
   0x8   : > { %p1138_p5 = pnand %p1141_p3, %p1137_p4 }
   0xa   : > { %1140 = dma.hbm_to_vmem [thread:$0]  (!%p1138_p5), %s379_s29, 16, %s381_s14, [#allocation3]  }
   0xb   : > { %1224 = dma.done.wait (%p1141_p3), [#allocation3], 16  }
   0xc   : > { %1226 = vsyncadd (%p1141_p3), [#allocation3], 4294967280  ;;  %p443_p6 = scmp.lt.s32.totalorder %s1103_s26, 1  ;;  %v466_v0 = vld [vmem:[%s1568_s1 + $0x70] sm:$0xff]  ;;  %v464_v1 = vld [vmem:[%s1568_s1 + $0x60] sm:$0xff]  ;;  %vm474_vm0 = vcmask 523264  }
   0xd   : > { %486 = vmatpush.msra.mxu0 %v466_v0  ;;  %v462_v2 = vld [vmem:[%s1568_s1 + $0x50] sm:$0xff]  ;;  %v460_v3 = vld [vmem:[%s1568_s1 + $0x40] sm:$0xff]  ;;  %s1232_s22 = smov 112   ;;  %s1233_s23 = smov 64   ;;  %vm529_vm1 = vcmask 130048   ;;  %vm555_vm2 = vcmask 64512  }
   0xe   : > { %s1582_s26 = smov (!%p443_p6, %s1103_s26), 1  ;;  %v458_v4 = vld [vmem:[%s1568_s1 + $0x30] sm:$0xff]  ;;  %v456_v5 = vld [vmem:[%s1568_s1 + $0x20] sm:$0xff]  ;;  %v467_v15 = vld [vmem:[%s1568_s1 + $0x78] sm:$0xff]  ;;  %s1234_s18 = smov 32  }
   0xf   : > { %487 = vmatpush.msra.mxu0 %v464_v1  ;;  %s1110_s27 = sshll.u32 %s1582_s26, 3  ;;  %v454_v6 = vld [vmem:[%s1568_s1 + $0x10] sm:$0xff]  ;;  %v452_v7 = vld [vmem:[%s1568_s1] sm:$0xff]  ;;  %v465_v16 = vld [vmem:[%s1568_s1 + $0x68] sm:$0xff]  ;;  %506 = vmatpush.msra.mxu1 %v467_v15  ;;  %s1235_s19 = smov 16  }
  0x10   : > { %s446_s17 = scalar_lea.vmem %s1567_s0, %s1110_s27  ;;  %v468_v9 = vld [vmem:[%s1569_s2] sm:$0x3]  ;;  %v463_v18 = vld [vmem:[%s1568_s1 + $0x58] sm:$0xff]  ;;  %v461_v20 = vld [vmem:[%s1568_s1 + $0x48] sm:$0xff]  ;;  %s1236_s15 = smov 48  }
  0x11   : > { %488 = vmatpush.msra.mxu0 %v462_v2  ;;  %v1353_v8 = vld [vmem:[%s446_s17] sm:$0xff]  ;;  %v470_v10 = vperm.slane %v468_v9, 0  ;;  %507 = vmatpush.msra.mxu1 %v465_v16  ;;  %v459_v21 = vld [vmem:[%s1568_s1 + $0x38] sm:$0xff]  ;;  %v457_v22 = vld [vmem:[%s1568_s1 + $0x28] sm:$0xff]  ;;  %v471_v31 = vperm.slane %v468_v9, 1  ;;  %s1237_s20 = smov 96   ;;  %s450_s29 = scalar_lea.vmem %s1580_s13, %s1110_s27 }
  0x12   : > { %v455_v23 = vld [vmem:[%s1568_s1 + $0x18] sm:$0xff]  ;;  %v453_v24 = vld [vmem:[%s1568_s1 + $0x8] sm:$0xff]  ;;  %v518_v40 = vld [vmem:[%s1570_s3] sm:$0xff] }
  0x13   : > { %489 = vmatpush.msra.mxu0 %v460_v3  ;;  %508 = vmatpush.msra.mxu1 %v463_v18  ;;  %v519_v34 = vld [vmem:[%s1570_s3 + $0x8] sm:$0xff]  ;;  %v521_v60 = vld [vmem:[%s1570_s3 + $0x18] sm:$0xff]  ;;  %v520_v61 = vld [vmem:[%s1570_s3 + $0x10] sm:$0xff] }
  0x14   : > { %v522_v18 = vld [vmem:[%s1570_s3 + $0x20] sm:$0xff] }
  0x15   : > { %490 = vmatpush.msra.mxu0 %v458_v4  ;;  %509 = vmatpush.msra.mxu1 %v461_v20 }
  0x17   : > { %491 = vmatpush.msra.mxu0 %v456_v5  ;;  %510 = vmatpush.msra.mxu1 %v459_v21 }
  0x19   : > { %492 = vmatpush.msra.mxu0 %v454_v6  ;;  %511 = vmatpush.msra.mxu1 %v457_v22 }
  0x1b   : > { %493 = vmatpush.msra.mxu0 %v452_v7  ;;  %512 = vmatpush.msra.mxu1 %v455_v23 }
  0x1c   : > { %1112 = vmatmul.msk.f32.vlgmr.msra.gmra.mxu0 %vm474_vm0, %v1353_v8 }
  0x1d   : > { %513 = vmatpush.msra.mxu1 %v453_v24 }
  0x1e   : > { %1113 = vmatmul.msk.f32.vlgmr.msra.gmra.mxu1 %vm474_vm0, %v1353_v8 }
  0x1f   : > { %697 = vmatpush.msrb.mxu1 %v519_v34 }
  0x21   : > { %698 = vmatpush.msrb.mxu1 %v518_v40 }
  0x99   : > { %v495_v11 = vpop.f32.mrf.mxu0 }
  0x9a   : > { %v1360_v12 = vadd.f32 %v495_v11, %v470_v10 }
  0x9b   : > { %v515_v32 = vpop.f32.mrf.mxu1 }
  0x9c   : > { %590 = vrot.lane.b32.xlu2 %v1360_v12, %s1232_s22  ;;  %527 = vrot.lane.b32.xlu0 %v1360_v12, %s1233_s23  ;;  %v1400_v33 = vadd.f32 %v515_v32, %v471_v31  ;;  %v1160_v32 = vld [vmem:[%s1571_s4] ss:$0 sm:$0xff] }
  0x9e   : > { %585 = vmatpush.msra.mxu3 %v1400_v33 }
  0xf6   : > { %v591_v39 = vpop.permute.xlu2 %590 }
 0x10e   : > { %v528_v13 = vpop.permute.xlu0 %527 }
 0x10f   : > { %1114 = vmatpush.xpose.msk.msrb.mxu0 %vm529_vm1, %v528_v13 }
 0x112   : > { %1115 = vmatmul.msk.f32.vlgmr.msrb.gmra.mxu0 %vm529_vm1, %v1360_v12 }
 0x18f   : > { %v551_v14 = vpop.f32.mrf.mxu0 }
 0x190   : > { %v554_v17 = vmul.f32 0.25, %v551_v14 }
 0x192   : > { %v556_v19 = vsel %vm555_vm2, %v554_v17, -inf }
 0x193   : > { %557 = vmax.xlane.f32.xlu0 %v556_v19 }
 0x1a7   : > { %705 = vrot.lane.b32.xlu0 %v1360_v12, %s1234_s18 }
 0x1af   : > { %795 = vrot.lane.b32.xlu0 %v1360_v12, %s1235_s19 }
 0x206   : > { %v558_v25 = vpop.xlane.xlu0 %557 }
 0x207   : > { %v559_v26 = vsub.f32 %v554_v17, %v558_v25  ;;  %v523_v17 = vld [vmem:[%s1570_s3 + $0x28] sm:$0xff]  ;;  %v525_v25 = vld [vmem:[%s1570_s3 + $0x38] sm:$0xff] }
 0x209   : > { %v560_v27 = vmul.f32 1.442695, %v559_v26  ;;  %v524_v26 = vld [vmem:[%s1570_s3 + $0x30] sm:$0xff] }
 0x20b   : > { %1167 = vpow2.f32 %v560_v27 }
 0x211   : > { %v1168_v28 = vpop.eup %1167 }
 0x212   : > { %v562_v29 = vsel %vm555_vm2, %v1168_v28, 0.0 }
 0x213   : > { %563 = vadd.xlane.f32.xlu1 %v562_v29 }
 0x219   : > { %v706_v30 = vpop.permute.xlu0 %705 }
 0x21a   : > { %1122 = vmatpush.xpose.msk.msra.mxu0 %vm529_vm1, %v706_v30 }
 0x221   : > { %v796_v49 = vpop.permute.xlu0 %795 }
 0x22c   : > { %592 = vrot.lane.b32.xlu1 %v1360_v12, %s1236_s15 }
 0x286   : > { %v564_v35 = vpop.xlane.xlu1 %563 }
 0x287   : > { %1169 = vrcp.f32 %v564_v35 }
 0x28d   : > { %v1170_v36 = vpop.eup %1169 }
 0x28e   : > { %v566_v37 = vmul.f32 %v1170_v36, %v1168_v28 }
 0x290   : > { %1116 = vmatmul.msk.f32.vlgmr.msra.gmra.mxu3 %vm555_vm2, %v566_v37 }
 0x29e   : > { %v593_v38 = vpop.permute.xlu1 %592 }
 0x29f   : > { %1117 = vmatpush.xpose.msk.msrb.mxu3 %vm529_vm1, %v593_v38  ;;  %v1239_v38 = vmov 64.0  }
 0x2a2   : > { %1118 = vmatmul.msk.f32.vlgmr.msrb.gmra.mxu3 %vm529_vm1, %v591_v39 }
 0x2a3   : > { %674 = vmatpush.msra.mxu3 %v521_v60 }
 0x2a5   : > { %675 = vmatpush.msra.mxu3 %v520_v61 }
 0x2a7   : > { %786 = vmatpush.msrb.mxu3 %v523_v17 }
 0x2a9   : > { %787 = vmatpush.msrb.mxu3 %v522_v18 }
 0x313   : > { %v587_v41 = vpop.f32.mrf.mxu3 }
 0x314   : > { %1121 = vmatmul.msk.f32.vlgmr.msrb.gmra.mxu1 %vm529_vm1, %v587_v41 }
 0x325   : > { %v615_v42 = vpop.f32.mrf.mxu3 }
 0x326   : > { %v618_v43 = vmul.f32 0.25, %v615_v42 }
 0x328   : > { %v619_v44 = vsel %vm555_vm2, %v618_v43, -inf }
 0x329   : > { %620 = vmax.xlane.f32.xlu2 %v619_v44 }
 0x341   : > { %631 = vrot.lane.b32.xlu2 %v1400_v33, %s1232_s22  ;;  %s1238_s22 = smov 80  }
 0x349   : > { %703 = vrot.lane.b32.xlu2 %v1360_v12, %s1237_s20 }
 0x391   : > { %v700_v19 = vpop.f32.mrf.mxu1 }
 0x39c   : > { %v621_v45 = vpop.xlane.xlu2 %620 }
 0x39d   : > { %v622_v46 = vsub.f32 %v618_v43, %v621_v45 }
 0x39f   : > { %v623_v47 = vmul.f32 1.442695, %v622_v46 }
 0x3a1   : > { %1171 = vpow2.f32 %v623_v47 }
 0x3a4   : > { %v632_v48 = vpop.permute.xlu2 %631 }
 0x3a5   : > { %652 = vmatpush.msra.mxu2 %v632_v48 }
 0x3a7   : > { %1126 = vmatpush.xpose.msk.msrb.mxu2 %vm529_vm1, %v796_v49  ;;  %v1172_v50 = vpop.eup %1171  ;;  %v935_v49 = vld [vmem:[%s1574_s7 + $0x38] sm:$0xff] }
 0x3a8   : > { %v625_v51 = vsel %vm555_vm2, %v1172_v50, 0.0 }
 0x3a9   : > { %626 = vadd.xlane.f32.xlu1 %v625_v51  ;;  %v933_v51 = vld [vmem:[%s1574_s7 + $0x28] sm:$0xff] }
 0x3ac   : > { %v704_v52 = vpop.permute.xlu2 %703 }
 0x3ad   : > { %1123 = vmatmul.msk.f32.vlgmr.msra.gmra.mxu0 %vm529_vm1, %v704_v52  ;;  %v932_v52 = vld [vmem:[%s1574_s7 + $0x20] sm:$0xff] }
 0x3c2   : > { %793 = vrot.lane.b32.xlu1 %v1360_v12, %s1238_s22 }
 0x41c   : > { %v627_v53 = vpop.xlane.xlu1 %626 }
 0x41d   : > { %1173 = vrcp.f32 %v627_v53  ;;  %v931_v53 = vld [vmem:[%s1574_s7 + $0x18] sm:$0xff] }
 0x423   : > { %v1174_v54 = vpop.eup %1173 }
 0x424   : > { %v629_v55 = vmul.f32 %v1174_v54, %v1172_v50  ;;  %v934_v50 = vld [vmem:[%s1574_s7 + $0x30] sm:$0xff] }
 0x425   : > { %v930_v54 = vld [vmem:[%s1574_s7 + $0x10] sm:$0xff] }
 0x426   : > { %1119 = vmatmul.msk.f32.vlgmr.msra.gmra.mxu2 %vm555_vm2, %v629_v55  ;;  %v929_v55 = vld [vmem:[%s1574_s7 + $0x8] sm:$0xff] }
 0x42a   : > { %v728_v56 = vpop.f32.mrf.mxu0 }
 0x42b   : > { %v731_v57 = vmul.f32 0.25, %v728_v56  ;;  %v928_v56 = vld [vmem:[%s1574_s7] sm:$0xff] }
 0x42d   : > { %v732_v58 = vsel %vm555_vm2, %v731_v57, -inf }
 0x42e   : > { %733 = vmax.xlane.f32.xlu0 %v732_v58  ;;  %v978_v58 = vld [vmem:[%s1576_s9 + $0x70] sm:$0xff] }
 0x434   : > { %v794_v59 = vpop.permute.xlu1 %793 }
 0x435   : > { %1127 = vmatmul.msk.f32.vlgmr.msrb.gmra.mxu2 %vm529_vm1, %v794_v59  ;;  %v977_v59 = vld [vmem:[%s1576_s9 + $0x68] sm:$0xff] }
 0x4a1   : > { %v734_v62 = vpop.xlane.xlu0 %733 }
 0x4a2   : > { %v735_v63 = vsub.f32 %v731_v57, %v734_v62  ;;  %v979_v57 = vld [vmem:[%s1576_s9 + $0x78] sm:$0xff]  ;;  %v976_v62 = vld [vmem:[%s1576_s9 + $0x60] sm:$0xff] }
 0x4a3   : > { %984 = vmatpush.msra.mxu2 %v979_v57 }
 0x4a4   : > { %v736_v0 = vmul.f32 1.442695, %v735_v63 }
 0x4a5   : > { %985 = vmatpush.msra.mxu2 %v978_v58 }
 0x4a6   : > { %1175 = vpow2.f32 %v736_v0  ;;  %v975_v0 = vld [vmem:[%s1576_s9 + $0x58] sm:$0xff] }
 0x4a7   : > { %986 = vmatpush.msra.mxu2 %v977_v59 }
 0x4a9   : > { %v654_v1 = vpop.f32.mrf.mxu2  ;;  %987 = vmatpush.msra.mxu2 %v976_v62 }
 0x4aa   : > { %1120 = vmatmul.msk.f32.vlgmr.msra.gmra.mxu3 %vm529_vm1, %v654_v1  ;;  %v974_v1 = vld [vmem:[%s1576_s9 + $0x50] sm:$0xff] }
 0x4ab   : > { %951 = vmatpush.msra.mxu3 %v935_v49  ;;  %988 = vmatpush.msra.mxu2 %v975_v0 }
 0x4ac   : > { %v1176_v2 = vpop.eup %1175 }
 0x4ad   : > { %v738_v3 = vsel %vm555_vm2, %v1176_v2, 0.0  ;;  %952 = vmatpush.msra.mxu3 %v934_v50  ;;  %989 = vmatpush.msra.mxu2 %v974_v1  ;;  %v1166_v50 = vld [vmem:[#allocation2] ss:$0 sm:$0xff] }
 0x4ae   : > { %739 = vadd.xlane.f32.xlu1 %v738_v3  ;;  %v972_v3 = vld [vmem:[%s1576_s9 + $0x40] sm:$0xff] }
 0x4af   : > { %953 = vmatpush.msra.mxu3 %v933_v51 }
 0x4b1   : > { %954 = vmatpush.msra.mxu3 %v932_v52 }
 0x4b3   : > { %955 = vmatpush.msra.mxu3 %v931_v53 }
 0x4b5   : > { %956 = vmatpush.msra.mxu3 %v930_v54 }
 0x4b7   : > { %957 = vmatpush.msra.mxu3 %v929_v55 }
 0x4b8   : > { %v818_v4 = vpop.f32.mrf.mxu2 }
 0x4b9   : > { %v821_v5 = vmul.f32 0.25, %v818_v4  ;;  %958 = vmatpush.msra.mxu3 %v928_v56 }
 0x4bb   : > { %v822_v6 = vsel %vm555_vm2, %v821_v5, -inf }
 0x4bc   : > { %823 = vmax.xlane.f32.xlu2 %v822_v6 }
 0x4d4   : > { %743 = vrot.lane.b32.xlu2 %v1400_v33, %s1237_s20 }
 0x521   : > { %v740_v7 = vpop.xlane.xlu1 %739 }
 0x522   : > { %1177 = vrcp.f32 %v740_v7  ;;  %v970_v7 = vld [vmem:[%s1576_s9 + $0x30] sm:$0xff] }
 0x528   : > { %v1178_v12 = vpop.eup %1177 }
 0x529   : > { %v742_v13 = vmul.f32 %v1178_v12, %v1176_v2  ;;  %v973_v2 = vld [vmem:[%s1576_s9 + $0x48] sm:$0xff]  ;;  %v968_v12 = vld [vmem:[%s1576_s9 + $0x20] sm:$0xff] }
 0x52a   : > { %990 = vmatpush.msra.mxu2 %v973_v2 }
 0x52c   : > { %991 = vmatpush.msra.mxu2 %v972_v3 }
 0x52d   : > { %v677_v28 = vpop.f32.mrf.mxu3 }
 0x52e   : > { %v701_v30 = vadd.f32 %v700_v19, %v677_v28  ;;  %v1162_v19 = vld [vmem:[%s1573_s6] ss:$0 sm:$0xff] }
 0x52f   : > { %v824_v9 = vpop.xlane.xlu2 %823 }
 0x530   : > { %v825_v10 = vsub.f32 %v821_v5, %v824_v9  ;;  %v971_v5 = vld [vmem:[%s1576_s9 + $0x38] sm:$0xff] }
 0x531   : > { %992 = vmatpush.msra.mxu2 %v971_v5 }
 0x532   : > { %v826_v11 = vmul.f32 1.442695, %v825_v10  ;;  %v969_v10 = vld [vmem:[%s1576_s9 + $0x28] sm:$0xff] }
 0x533   : > { %993 = vmatpush.msra.mxu2 %v970_v7 }
 0x534   : > { %1179 = vpow2.f32 %v826_v11 }
 0x535   : > { %994 = vmatpush.msra.mxu2 %v969_v10 }
 0x537   : > { %v744_v14 = vpop.permute.xlu2 %743  ;;  %995 = vmatpush.msra.mxu2 %v968_v12 }
 0x538   : > { %764 = vmatpush.msra.mxu1 %v744_v14  ;;  %v967_v14 = vld [vmem:[%s1576_s9 + $0x18] sm:$0xff] }
 0x539   : > { %1124 = vmatmul.msk.f32.vlgmr.msra.gmra.mxu1 %vm555_vm2, %v742_v13  ;;  %996 = vmatpush.msra.mxu2 %v967_v14 }
 0x53a   : > { %v1180_v15 = vpop.eup %1179  ;;  %876 = vmatpush.msrb.mxu1 %v525_v25  ;;  %v1163_v25 = vld [vmem:[%s1575_s8] ss:$0 sm:$0xff] }
 0x53b   : > { %v828_v16 = vsel %vm555_vm2, %v1180_v15, 0.0 }
 0x53c   : > { %829 = vadd.xlane.f32.xlu0 %v828_v16  ;;  %877 = vmatpush.msrb.mxu1 %v524_v26  ;;  %v1161_v16 = vld [vmem:[%s1572_s5] ss:$0 sm:$0xff] }
 0x550   : > { %833 = vrot.lane.b32.xlu0 %v1400_v33, %s1238_s22 }
 0x5af   : > { %v830_v20 = vpop.xlane.xlu0 %829 }
 0x5b0   : > { %1181 = vrcp.f32 %v830_v20 }
 0x5b1   : > { %1183 = vrcp.f32 %v1239_v38 }
 0x5b6   : > { %v766_v21 = vpop.f32.mrf.mxu1  ;;  %v1182_v22 = vpop.eup %1181 }
 0x5b7   : > { %1125 = vmatmul.msk.f32.vlgmr.msrb.gmra.mxu3 %vm529_vm1, %v766_v21  ;;  %v832_v23 = vmul.f32 %v1182_v22, %v1180_v15  ;;  %v1184_v39 = vpop.eup %1183  ;;  %v966_v22 = vld [vmem:[%s1576_s9 + $0x10] sm:$0xff] }
 0x5b8   : > { %v895_v40 = vmul.f32 64.0, %v1184_v39  ;;  %vm899_vm3 = vweird.f32 %v1184_v39  ;;  %997 = vmatpush.msra.mxu2 %v966_v22 }
 0x5ba   : > { %v896_v41 = vsub.f32 1.0, %v895_v40 }
 0x5bc   : > { %v897_v42 = vmul.f32 %v1184_v39, %v896_v41 }
 0x5be   : > { %v898_v43 = vadd.f32 %v1184_v39, %v897_v42 }
 0x5c0   : > { %v1461_v44 = vsel %vm899_vm3, %v1184_v39, %v898_v43 }
 0x5c2   : > { %v834_v24 = vpop.permute.xlu0 %833 }
 0x5c3   : > { %854 = vmatpush.msrb.mxu0 %v834_v24  ;;  %v964_v24 = vld [vmem:[%s1576_s9] sm:$0xff] }
 0x5c4   : > { %1128 = vmatmul.msk.f32.vlgmr.msrb.gmra.mxu0 %vm555_vm2, %v832_v23  ;;  %v965_v23 = vld [vmem:[%s1576_s9 + $0x8] sm:$0xff] }
 0x5c5   : > { %998 = vmatpush.msra.mxu2 %v965_v23 }
 0x5c7   : > { %999 = vmatpush.msra.mxu2 %v964_v24 }
 0x63a   : > { %v789_v29 = vpop.f32.mrf.mxu3 }
 0x63b   : > { %v792_v31 = vadd.f32 %v789_v29, %v701_v30  ;;  %v1164_v29 = vld [vmem:[%s1577_s10] ss:$0 sm:$0xff] }
 0x641   : > { %v856_v27 = vpop.f32.mrf.mxu0 }
 0x642   : > { %1129 = vmatmul.msk.f32.vlgmr.msrb.gmra.mxu1 %vm529_vm1, %v856_v27 }
 0x6bf   : > { %v879_v33 = vpop.f32.mrf.mxu1 }
 0x6c0   : > { %v882_v34 = vadd.f32 %v879_v33, %v792_v31 }
 0x6c2   : > { %v887_v35 = vadd.f32 %v1160_v32, %v882_v34 }
 0x6c4   : > { %v888_v36 = vadd.f32 %v887_v35, %v1353_v8 }
 0x6c6   : > { %v891_v37 = vsel %vm474_vm0, %v888_v36, 0.0 }
 0x6c7   : > { %892 = vadd.xlane.f32.xlu1 %v891_v37 }
 0x73a   : > { %v893_v45 = vpop.xlane.xlu1 %892 }
 0x73b   : > { %v901_v46 = vmul.f32 %v1461_v44, %v893_v45 }
 0x73d   : > { %v902_v47 = vsub.f32 %v888_v36, %v901_v46 }
 0x73f   : > { %v903_v48 = vmul.f32 %v902_v47, %v902_v47 }
 0x741   : > { %v904_v8 = vsel %vm474_vm0, %v903_v48, 0.0 }
 0x742   : > { %905 = vadd.xlane.f32.xlu2 %v904_v8  ;;  %v1165_v8 = vld [vmem:[%s1578_s11] ss:$0 sm:$0xff] }
 0x7b5   : > { %v906_v60 = vpop.xlane.xlu2 %905 }
 0x7b6   : > { %v907_v61 = vmul.f32 %v906_v60, %v1461_v44 }
 0x7b8   : > { %v908_v63 = vadd.f32 1e-05, %v907_v61 }
 0x7ba   : > { %1185 = vrsqrt.f32 %v908_v63  ;;  %vm915_vm5 = vweird.f32 %v908_v63 }
 0x7c0   : > { %v1186_v4 = vpop.eup %1185 }
 0x7c1   : > { %v910_v6 = vmul.f32 %v1186_v4, %v908_v63  ;;  %vm916_vm4 = vweird.f32 %v1186_v4 }
 0x7c2   : > { %vm917_vm6 = vmor %vm915_vm5, %vm916_vm4 }
 0x7c3   : > { %v911_v9 = vmul.f32 %v1186_v4, %v910_v6 }
 0x7c5   : > { %v912_v11 = vmul.f32 0.5, %v911_v9 }
 0x7c7   : > { %v913_v13 = vsub.f32 1.5, %v912_v11 }
 0x7c9   : > { %v914_v15 = vmul.f32 %v1186_v4, %v913_v13 }
 0x7cb   : > { %v918_v17 = vsel %vm917_vm6, %v1186_v4, %v914_v15 }
 0x7cc   : > { %v919_v18 = vmul.f32 %v918_v17, %v902_v47 }
 0x7ce   : > { %v923_v20 = vmul.f32 %v1161_v16, %v919_v18 }
 0x7d0   : > { %v927_v21 = vadd.f32 %v1162_v19, %v923_v20 }
 0x7d2   : > { %1130 = vmatmul.msk.f32.vlgmr.msra.gmra.mxu3 %vm474_vm0, %v927_v21 }
 0x855   : > { %v960_v26 = vpop.f32.mrf.mxu3 }
 0x856   : > { %v961_v27 = vadd.f32 %v1163_v25, %v960_v26 }
 0x858   : > { %v963_v28 = vmax.f32 %v961_v27, 0.0 }
 0x85a   : > { %1000 = vmatmul.f32.vlgmr.msra.gmra.mxu2 %v963_v28 }
 0x8dd   : > { %v1001_v30 = vpop.f32.mrf.mxu2 }
 0x8de   : > { %v1002_v31 = vadd.f32 %v1164_v29, %v1001_v30 }
 0x8e0   : > { %v1004_v32 = vadd.f32 %v1002_v31, %v927_v21 }
 0x8e2   : > { %v1007_v33 = vsel %vm474_vm0, %v1004_v32, 0.0 }
 0x8e3   : > { %1008 = vadd.xlane.f32.xlu0 %v1007_v33 }
 0x956   : > { %v1009_v34 = vpop.xlane.xlu0 %1008 }
 0x957   : > { %v1010_v35 = vmul.f32 %v1009_v34, %v1461_v44 }
 0x959   : > { %v1011_v36 = vsub.f32 %v1004_v32, %v1010_v35 }
 0x95b   : > { %v1012_v37 = vmul.f32 %v1011_v36, %v1011_v36 }
 0x95d   : > { %v1013_v38 = vsel %vm474_vm0, %v1012_v37, 0.0 }
 0x95e   : > { %1014 = vadd.xlane.f32.xlu1 %v1013_v38 }
 0x9d1   : > { %v1015_v39 = vpop.xlane.xlu1 %1014 }
 0x9d2   : > { %v1016_v40 = vmul.f32 %v1015_v39, %v1461_v44 }
 0x9d4   : > { %v1017_v41 = vadd.f32 1e-05, %v1016_v40 }
 0x9d6   : > { %1187 = vrsqrt.f32 %v1017_v41  ;;  %vm1024_vm8 = vweird.f32 %v1017_v41 }
 0x9dc   : > { %v1188_v42 = vpop.eup %1187 }
 0x9dd   : > { %v1019_v43 = vmul.f32 %v1188_v42, %v1017_v41  ;;  %vm1025_vm7 = vweird.f32 %v1188_v42 }
 0x9de   : > { %vm1026_vm9 = vmor %vm1024_vm8, %vm1025_vm7 }
 0x9df   : > { %v1020_v45 = vmul.f32 %v1188_v42, %v1019_v43 }
 0x9e1   : > { %v1021_v46 = vmul.f32 0.5, %v1020_v45 }
 0x9e3   : > { %v1022_v47 = vsub.f32 1.5, %v1021_v46 }
 0x9e5   : > { %v1023_v48 = vmul.f32 %v1188_v42, %v1022_v47 }
 0x9e7   : > { %v1027_v49 = vsel %vm1026_vm9, %v1188_v42, %v1023_v48 }
 0x9e8   : > { %v1028_v51 = vmul.f32 %v1027_v49, %v1011_v36 }
 0x9ea   : > { %v1032_v44 = vmul.f32 %v1165_v8, %v1028_v51 }
 0x9ec   : > { %v1036_v52 = vadd.f32 %v1166_v50, %v1032_v44 }
 0x9ee   : > { %1037 = vst.msk [vmem:[%s450_s29] sm:$0xff] %vm474_vm0, %v1036_v52 }
 0x9ef PF: > { %s24_s25 = sadd.s32 1, %s1229_s25  }
 0x9f0   : > { %p21_p7 = scmp.ge.s32.totalorder %s24_s25, 4  }
 0x9f2   :  { %23 = sbr.rel (!%p21_p7) target bundleno = 1 (0x1), region = 107 }
 0x9f7   :  { %1057 = vsyncpa [#allocation3], 1 }
 0x9f8   :  { %1059 = vsyncpa [#allocation3 + $0x1], 1 }

</bundles_post_ra>
